<compile_context>
chip_gen: v7x
topology: tpu7x:2x2x1
jax: 0.10.0
libtpu: 0.0.40
codegen_flags: <defaults>
</compile_context>

<pallas_src>
import math

import jax
import jax.numpy as jnp
from jax.experimental import pallas as pl
from jax.experimental.pallas import tpu as pltpu


# ----------------------------------------------------------------------------
# Small helpers.
# ----------------------------------------------------------------------------
def _round_up(x, m):
    return ((x + m - 1) // m) * m


def _pick_tm(m, cands=(128, 256)):
    """Output-point tile (MXU lane dim; must be a multiple of 128).

    Minimise (total padded rows + per-TensorCore critical path assuming two
    cores split the parallel axis); tie-break towards the larger tile."""
    best = None
    for tm in cands:
        m_p = _round_up(m, tm)
        g = m_p // tm
        score = m_p + ((g + 1) // 2) * tm
        if best is None or score < best[0] or (score == best[0] and tm > best[1]):
            best = (score, tm)
    return best[1]


def _pick_tn(n, cands=(512, 384, 256, 128)):
    """Input-point (reduction-axis) tile: minimise padding, prefer larger."""
    best = None
    for t in cands:
        key = (_round_up(n, t), -t)
        if best is None or key < best[0]:
            best = (key, t)
    return best[1]


def _chunk_rows(tm):
    # Inner sub-chunk along the input-point axis so each (tc, tm) f32
    # distance/mask intermediate is ~<= 32 vregs (no spill traffic).
    return max(32, 16384 // tm)


def _prep_feats_and_weights(feats, weights):
    """Choose contraction order and build W^T padded lane-dense.

    If fo < fi the (fi x fo) projection is folded into the features before
    the big aggregation matmul (1/counts row scaling commutes with the
    right-multiply, so this is exact) and the in-kernel projection is an
    identity.  Returns f32 effective features (n, f_carry) and
    w_t (fo_p, f_carry + 1) with a zero column for the counts row."""
    weights = jnp.asarray(weights, jnp.float32)
    feats = jnp.asarray(feats, jnp.float32)
    fi, fo = weights.shape
    if fo < fi:
        feats_eff = feats @ weights                      # (n, fo)
        proj = jnp.eye(fo, dtype=jnp.float32)
    else:
        feats_eff = feats
        proj = weights                                   # (fi, fo)
    f_carry = feats_eff.shape[1]
    fa = f_carry + 1                                     # + ones row (counts)
    fo_p = _round_up(fo, 128)                            # lane-dense output
    w_t = jnp.zeros((fo_p, fa), jnp.float32).at[:fo, :f_carry].set(proj.T)
    return feats_eff, w_t, f_carry, fa, fo, fo_p


def _feats_t_padded(feats_eff, n_p):
    """Transposed augmented features (fa, n_p) in bf16 (ones row = counts)."""
    n = feats_eff.shape[0]
    feats_aug = jnp.concatenate(
        [feats_eff, jnp.ones((n, 1), jnp.float32)], axis=1)       # (n, fa)
    feats_t = jnp.pad(feats_aug.T, ((0, 0), (0, n_p - n)))        # (fa, n_p)
    return feats_t.astype(jnp.bfloat16)


# ----------------------------------------------------------------------------
# Neighborhood object: padded, int8, n-major mask reused as-is by the apply
# path (no wrapper-side recast / pad / transpose traffic).
# ----------------------------------------------------------------------------
class Neighborhood:
    def __init__(self, mask_t_padded, num_out, num_in):
        self.mask_t_padded = mask_t_padded        # (n_p, m_p) int8, 0/1
        self.num_out = num_out                    # m
        self.num_in = num_in                      # n

    def dense(self):
        """(m, n) float mask (for inspection / verification)."""
        return self.mask_t_padded[:self.num_in, :self.num_out].T.astype(
            jnp.float32)


def _neighborhood_from_dense(mask_mn):
    """Fallback: wrap an externally supplied dense (m, n) mask."""
    mask_mn = jnp.asarray(mask_mn)
    m, n = mask_mn.shape
    mask_t = (mask_mn != 0).astype(jnp.int8).T                    # (n, m)
    m_p = _round_up(m, 128)
    n_p = _round_up(n, 128)
    mask_t_p = jnp.pad(mask_t, ((0, n_p - n), (0, m_p - m)))
    return Neighborhood(mask_t_p, m, n)


# ----------------------------------------------------------------------------
# Kernel 1: build neighborhood AND run the convolution (p_neighborhood=None).
#   grid = (m_p/tm, n_p/tn); N (input points) is the "arbitrary" reduction
#   axis, M (output points) is "parallel" (split across v7x TensorCores).
# ----------------------------------------------------------------------------
def _make_build_kernel(r2, d, f_carry, tm, tn, tc):
    nchunks = tn // tc

    def kernel(pts_in_ref, pts_out_t_ref, feats_t_ref, w_ref,
               out_ref, neigh_ref, acc_ref, maskbuf_ref):
        k = pl.program_id(1)

        @pl.when(k == 0)
        def _init():
            acc_ref[...] = jnp.zeros_like(acc_ref)

        pts_out_t = pts_out_t_ref[...]                    # (d, tm) f32

        # Distances / mask in small (tc, tm) chunks so the f32 intermediates
        # stay in the vreg file; bf16 mask goes to a VMEM scratch that feeds
        # a single MXU matmul per grid step, int8 mask goes straight out.
        for j in range(nchunks):
            r0 = j * tc
            pin = pts_in_ref[r0:r0 + tc, :]               # (tc, d) f32
            d2 = None
            for c in range(d):                            # d is tiny & static
                diff = pin[:, c:c + 1] - pts_out_t[c:c + 1, :]    # (tc, tm)
                sq = diff * diff
                d2 = sq if d2 is None else d2 + sq
            mask = d2 <= r2                               # (tc, tm) bool
            neigh_ref[r0:r0 + tc, :] = mask.astype(jnp.int8)
            maskbuf_ref[r0:r0 + tc, :] = (
                mask.astype(jnp.float32).astype(jnp.bfloat16))

        # acc^T (fa, tm) += feats_aug^T (fa, tn) @ mask^T (tn, tm):
        # MXU N dim = tm (128-multiple), bf16 operands, f32 accumulation.
        acc_ref[...] += jnp.dot(feats_t_ref[...], maskbuf_ref[...],
                                preferred_element_type=jnp.float32)

        @pl.when(k == pl.num_programs(1) - 1)
        def _finalize():
            acc = acc_ref[...]                            # (fa, tm) f32
            counts = acc[f_carry:f_carry + 1, :]          # ones-row of feats
            inv = 1.0 / jnp.maximum(counts, 1.0)          # exact divide
            # w_ref is W^T zero-padded to (fo_p, fa) with a zero column for
            # the counts row, so no slicing of acc is needed here.
            out_ref[...] = jnp.dot(w_ref[...], acc * inv,
                                   preferred_element_type=jnp.float32
                                   ).astype(out_ref.dtype)

    return kernel


# ----------------------------------------------------------------------------
# Kernel 2: convolution only, with a precomputed int8 n-major mask.
# ----------------------------------------------------------------------------
def _make_apply_kernel(f_carry, tm, tn, tc):
    nchunks = tn // tc

    def kernel(neigh_ref, feats_t_ref, w_ref, out_ref, acc_ref, maskbuf_ref):
        k = pl.program_id(1)

        @pl.when(k == 0)
        def _init():
            acc_ref[...] = jnp.zeros_like(acc_ref)

        # int8 -> bf16 in small chunks (mask values are already 0/1).
        for j in range(nchunks):
            r0 = j * tc
            maskbuf_ref[r0:r0 + tc, :] = (
                neigh_ref[r0:r0 + tc, :].astype(jnp.float32)
                .astype(jnp.bfloat16))

        acc_ref[...] += jnp.dot(feats_t_ref[...], maskbuf_ref[...],
                                preferred_element_type=jnp.float32)

        @pl.when(k == pl.num_programs(1) - 1)
        def _finalize():
            acc = acc_ref[...]
            counts = acc[f_carry:f_carry + 1, :]
            inv = 1.0 / jnp.maximum(counts, 1.0)
            out_ref[...] = jnp.dot(w_ref[...], acc * inv,
                                   preferred_element_type=jnp.float32
                                   ).astype(out_ref.dtype)

    return kernel


# ----------------------------------------------------------------------------
# Wrappers: padding / tiling / pallas_call plumbing.
# ----------------------------------------------------------------------------
def iconv_build_and_convolve(pts_in, pts_out, feats, weights, radius):
    pts_in = jnp.asarray(pts_in, jnp.float32)
    pts_out = jnp.asarray(pts_out, jnp.float32)
    m, d = pts_out.shape
    n = pts_in.shape[0]

    feats_eff, w_t, f_carry, fa, fo, fo_p = _prep_feats_and_weights(
        feats, weights)

    tm = _pick_tm(m)
    tn = _pick_tn(n)
    tc = _chunk_rows(tm)
    m_p = _round_up(m, tm)
    n_p = _round_up(n, tn)
    grid = (m_p // tm, n_p // tn)

    # inf sentinel: any distance involving a padded point is +inf or NaN,
    # both of which compare False against radius^2.
    pts_in_p = jnp.pad(pts_in, ((0, n_p - n), (0, 0)),
                       constant_values=jnp.inf)                    # (n_p, d)
    pts_out_t_p = jnp.pad(pts_out, ((0, m_p - m), (0, 0)),
                          constant_values=jnp.inf).T               # (d, m_p)
    feats_t = _feats_t_padded(feats_eff, n_p)                      # (fa, n_p)

    r2 = float(radius) ** 2
    kernel = _make_build_kernel(r2, d, f_carry, tm, tn, tc)

    flops = m_p * n_p * (3 * d + 2 + 2 * fa) + 2 * fo_p * fa * m_p
    bytes_accessed = (m_p * n_p                                    # int8 mask
                      + grid[0] * n_p * (4 * d + 2 * fa)
                      + 4 * (m_p * d + fo_p * m_p))

    out_t_p, neigh_t_p = pl.pallas_call(
        kernel,
        out_shape=(
            jax.ShapeDtypeStruct((fo_p, m_p), jnp.float32),
            jax.ShapeDtypeStruct((n_p, m_p), jnp.int8),
        ),
        grid_spec=pltpu.PrefetchScalarGridSpec(
            num_scalar_prefetch=0,
            grid=grid,
            in_specs=[
                pl.BlockSpec((tn, d), lambda i, k: (k, 0)),      # pts_in
                pl.BlockSpec((d, tm), lambda i, k: (0, i)),      # pts_out^T
                pl.BlockSpec((fa, tn), lambda i, k: (0, k)),     # feats^T|1 bf16
                pl.BlockSpec((fo_p, fa), lambda i, k: (0, 0)),   # W^T (tiny)
            ],
            out_specs=(
                pl.BlockSpec((fo_p, tm), lambda i, k: (0, i)),   # out^T
                pl.BlockSpec((tn, tm), lambda i, k: (k, i)),     # mask^T int8
            ),
            scratch_shapes=[
                pltpu.VMEM((fa, tm), jnp.float32),               # acc^T
                pltpu.VMEM((tn, tm), jnp.bfloat16),              # bf16 mask
            ],
        ),
        compiler_params=pltpu.CompilerParams(
            dimension_semantics=("parallel", "arbitrary")),
        cost_estimate=pl.CostEstimate(
            flops=int(flops), transcendentals=0,
            bytes_accessed=int(bytes_accessed)),
    )(pts_in_p, pts_out_t_p, feats_t, w_t)

    out = out_t_p[:fo, :m].T                                       # (m, fo)
    return out, Neighborhood(neigh_t_p, m, n)


def iconv_apply_neighborhood(p_neighborhood, feats, weights):
    neigh = (p_neighborhood if isinstance(p_neighborhood, Neighborhood)
             else _neighborhood_from_dense(p_neighborhood))
    mask_t_p = neigh.mask_t_padded                                 # (n_p, m_p)
    n_p, m_p = mask_t_p.shape
    m, n = neigh.num_out, neigh.num_in

    feats_eff, w_t, f_carry, fa, fo, fo_p = _prep_feats_and_weights(
        feats, weights)
    feats_t = _feats_t_padded(feats_eff, n_p)                      # (fa, n_p)

    tm = 256 if m_p % 256 == 0 else 128
    tn = next(t for t in (512, 384, 256, 128) if n_p % t == 0)
    tc = _chunk_rows(tm)
    grid = (m_p // tm, n_p // tn)

    flops = 2 * fa * m_p * n_p + 2 * fo_p * fa * m_p
    bytes_accessed = m_p * n_p + grid[0] * n_p * 2 * fa + 4 * fo_p * m_p

    out_t_p = pl.pallas_call(
        _make_apply_kernel(f_carry, tm, tn, tc),
        out_shape=jax.ShapeDtypeStruct((fo_p, m_p), jnp.float32),
        grid_spec=pltpu.PrefetchScalarGridSpec(
            num_scalar_prefetch=0,
            grid=grid,
            in_specs=[
                pl.BlockSpec((tn, tm), lambda i, k: (k, i)),     # mask^T int8
                pl.BlockSpec((fa, tn), lambda i, k: (0, k)),     # feats^T|1
                pl.BlockSpec((fo_p, fa), lambda i, k: (0, 0)),   # W^T (tiny)
            ],
            out_specs=pl.BlockSpec((fo_p, tm), lambda i, k: (0, i)),
            scratch_shapes=[
                pltpu.VMEM((fa, tm), jnp.float32),
                pltpu.VMEM((tn, tm), jnp.bfloat16),
            ],
        ),
        compiler_params=pltpu.CompilerParams(
            dimension_semantics=("parallel", "arbitrary")),
        cost_estimate=pl.CostEstimate(
            flops=int(flops), transcendentals=0,
            bytes_accessed=int(bytes_accessed)),
    )(mask_t_p, feats_t, w_t)

    return out_t_p[:fo, :m].T                                      # (m, fo)


# ----------------------------------------------------------------------------
# Module wrapper (matches the PyTorch IConvLayer interface).
# ----------------------------------------------------------------------------
class IConvLayer:
    """JAX/Pallas port of the point-convolution layer interface."""

    def __init__(self, p_dims, p_in_features, p_out_features,
                 p_constant_weight_var=True, p_const_var_value=1.0,
                 p_key=None):
        self.num_dims_ = p_dims
        self.feat_input_size_ = p_in_features
        self.feat_output_size_ = p_out_features
        self.wamup_state_ = False
        self.use_const_variance_init_ = p_constant_weight_var
        self.out_constant_variance_ = p_const_var_value
        self.accum_weight_var_ = 0.0
        self.accum_weight_var_counter_ = 1.0

        if p_key is None:
            p_key = jax.random.PRNGKey(0)
        if p_constant_weight_var:
            std = math.sqrt(p_const_var_value / float(p_in_features))
        else:
            std = math.sqrt(2.0 / float(p_in_features + p_out_features))
        self.conv_weights_ = std * jax.random.normal(
            p_key, (p_in_features, p_out_features), dtype=jnp.float32)

    def set_init_warmup_state(self, p_init_warmup_state):
        self.wamup_state_ = p_init_warmup_state

    def __update_weight_var__(self, p_new_var):
        self.accum_weight_var_ += ((p_new_var - self.accum_weight_var_)
                                   / self.accum_weight_var_counter_)
        self.accum_weight_var_counter_ += 1.0

    def __create_and_convolve__(self, p_pc_in, p_pc_out, p_in_features,
                                p_radius):
        return iconv_build_and_convolve(p_pc_in, p_pc_out, p_in_features,
                                        self.conv_weights_, p_radius)

    def __compute_convolution__(self, p_pc_in, p_pc_out, p_in_features,
                                p_radius, p_neighborhood):
        return iconv_apply_neighborhood(p_neighborhood, p_in_features,
                                        self.conv_weights_)

    def forward(self, p_pc_in, p_pc_out, p_in_features, p_radius,
                p_neighborhood=None, p_max_neighs=0):
        # TODO(synk): p_max_neighs (neighbor truncation) has no clean
        # dense-mask equivalent; the radius mask keeps all in-radius neighbors.
        if p_neighborhood is None:
            out_features, neighborhood = self.__create_and_convolve__(
                p_pc_in, p_pc_out, p_in_features, p_radius)
            return (out_features, neighborhood)
        return self.__compute_convolution__(p_pc_in, p_pc_out, p_in_features,
                                            p_radius, p_neighborhood)


# ---------------------------------------------------------------------------
# Pure-JAX reference for verification.
# ---------------------------------------------------------------------------
def _reference(pts_in, pts_out, feats, w, radius):
    d2 = jnp.sum((pts_out[:, None, :] - pts_in[None, :, :]) ** 2, axis=-1)
    mask = (d2 <= radius * radius).astype(jnp.float32)
    counts = jnp.maximum(jnp.sum(mask, axis=-1, keepdims=True), 1.0)
    agg = (mask @ feats) / counts
    return agg @ w, mask


if __name__ == "__main__":
    key = jax.random.PRNGKey(0)
    configs = [
        # (n_in, n_out, f_in, f_out, radius)
        (1000, 300, 8, 16, 0.2),    # fi <= fo path, multi-tile on both axes
        (600, 200, 32, 8, 0.25),    # fo < fi -> feats@W pre-projection path
    ]
    for idx, (n_in, n_out, f_in, f_out, radius) in enumerate(configs):
        key, k_pi, k_po, k_f, k_w = jax.random.split(key, 5)
        pts_in = jax.random.uniform(k_pi, (n_in, 3), dtype=jnp.float32)
        pts_out = jax.random.uniform(k_po, (n_out, 3), dtype=jnp.float32)
        feats = jax.random.normal(k_f, (n_in, f_in), dtype=jnp.float32)

        layer = IConvLayer(3, f_in, f_out, p_constant_weight_var=True,
                           p_const_var_value=1.0, p_key=k_w)

        # Path 1: no neighborhood provided -> (features, Neighborhood).
        out1, neigh = layer.forward(pts_in, pts_out, feats, radius)
        out1 = jax.block_until_ready(out1)
        jax.block_until_ready(neigh.mask_t_padded)

        # Path 2: reuse the precomputed int8 n-major neighborhood directly.
        out2 = layer.forward(pts_in, pts_out, feats, radius,
                             p_neighborhood=neigh)
        out2 = jax.block_until_ready(out2)

        ref_out, ref_mask = _reference(pts_in, pts_out, feats,
                                       layer.conv_weights_, radius)

        assert out1.shape == (n_out, f_out)
        assert neigh.mask_t_padded.dtype == jnp.int8
        assert jnp.array_equal(neigh.dense(), ref_mask), \
            "neighborhood mask mismatch"
        # bf16 feature operands -> modest tolerance vs. the f32 reference.
        assert jnp.allclose(out1, ref_out, atol=1e-2, rtol=1e-2), \
            "build+convolve features mismatch"
        assert jnp.allclose(out2, ref_out, atol=1e-2, rtol=1e-2), \
            "precomputed-neighborhood features mismatch"
        assert jnp.allclose(out1, out2, atol=1e-5, rtol=1e-5), \
            "build path and apply path disagree"

        if idx == 0:
            # Fallback: externally supplied dense (m, n) mask.
            out3 = layer.forward(pts_in, pts_out, feats, radius,
                                 p_neighborhood=ref_mask)
            out3 = jax.block_until_ready(out3)
            assert jnp.allclose(out3, ref_out, atol=1e-2, rtol=1e-2), \
                "dense-mask fallback features mismatch"

    print("KERNEL_OK")
</pallas_src>

<mosaic_0001>
module attributes {stable_mosaic.version = 11 : i64} {
  func.func @kernel(%arg0: i32, %arg1: i32, %arg2: memref<512x3xf32, #tpu.memory_space<vmem>>, %arg3: memref<3x128xf32, #tpu.memory_space<vmem>>, %arg4: memref<9x512xbf16, #tpu.memory_space<vmem>>, %arg5: memref<128x9xf32, #tpu.memory_space<vmem>>, %arg6: memref<128x128xf32, #tpu.memory_space<vmem>>, %arg7: memref<512x128xi8, #tpu.memory_space<vmem>>, %arg8: memref<9x128xf32, #tpu.memory_space<vmem>>, %arg9: memref<512x128xbf16, #tpu.memory_space<vmem>>) attributes {dimension_semantics = [#tpu.dimension_semantics<parallel>, #tpu.dimension_semantics<arbitrary>], iteration_bounds = array<i64: 3, 2>, scalar_prefetch = 0 : i64, scratch_operands = 2 : i64, tpu.core_type = #tpu.core_type<tc>, window_params = [{transform_indices = @transform_0, window_bounds = array<i64: 512, 3>}, {transform_indices = @transform_1, window_bounds = array<i64: 3, 128>}, {transform_indices = @transform_2, window_bounds = array<i64: 9, 512>}, {pipeline_mode = #tpu.pipeline_mode<synchronous>, transform_indices = @transform_3, window_bounds = array<i64: 128, 9>}, {transform_indices = @transform_4, window_bounds = array<i64: 128, 128>}, {transform_indices = @transform_5, window_bounds = array<i64: 512, 128>}]} {
    %c0_i32 = arith.constant 0 : i32
    %0 = arith.cmpi eq, %arg1, %c0_i32 : i32
    %1 = arith.extui %0 : i1 to i32
    %c0_i32_0 = arith.constant 0 : i32
    %2 = arith.cmpi ne, %1, %c0_i32_0 : i32
    scf.if %2 {
      %cst_36 = arith.constant 0.000000e+00 : f32
      %129 = vector.broadcast %cst_36 : f32 to vector<9x128xf32>
      %c0_37 = arith.constant 0 : index
      %c0_38 = arith.constant 0 : index
      %130 = vector.load %arg8[%c0_37, %c0_38] : memref<9x128xf32, #tpu.memory_space<vmem>>, vector<9x128xf32>
      tpu.vector_store %arg8[%c0_37, %c0_38], %129 {strides = array<i32>} : memref<9x128xf32, #tpu.memory_space<vmem>>, vector<9x128xf32>,
    } else {
    }
    %c0 = arith.constant 0 : index
    %c0_1 = arith.constant 0 : index
    %3 = vector.load %arg3[%c0, %c0_1] : memref<3x128xf32, #tpu.memory_space<vmem>>, vector<3x128xf32>
    %c0_2 = arith.constant 0 : index
    %c0_3 = arith.constant 0 : index
    %4 = vector.load %arg2[%c0_2, %c0_3] : memref<512x3xf32, #tpu.memory_space<vmem>>, vector<128x3xf32>
    %5 = vector.extract_strided_slice %4 {offsets = [0, 0], sizes = [128, 1], strides = [1, 1]} : vector<128x3xf32> to vector<128x1xf32>
    %6 = vector.extract_strided_slice %3 {offsets = [0, 0], sizes = [1, 128], strides = [1, 1]} : vector<3x128xf32> to vector<1x128xf32>
    %7 = vector.broadcast %5 : vector<128x1xf32> to vector<128x128xf32>
    %8 = vector.broadcast %6 : vector<1x128xf32> to vector<128x128xf32>
    %9 = arith.subf %7, %8 : vector<128x128xf32>
    %10 = arith.mulf %9, %9 : vector<128x128xf32>
    %11 = vector.extract_strided_slice %4 {offsets = [0, 1], sizes = [128, 1], strides = [1, 1]} : vector<128x3xf32> to vector<128x1xf32>
    %12 = vector.extract_strided_slice %3 {offsets = [1, 0], sizes = [1, 128], strides = [1, 1]} : vector<3x128xf32> to vector<1x128xf32>
    %13 = vector.broadcast %11 : vector<128x1xf32> to vector<128x128xf32>
    %14 = vector.broadcast %12 : vector<1x128xf32> to vector<128x128xf32>
    %15 = arith.subf %13, %14 : vector<128x128xf32>
    %16 = arith.mulf %15, %15 : vector<128x128xf32>
    %17 = arith.addf %10, %16 : vector<128x128xf32>
    %18 = vector.extract_strided_slice %4 {offsets = [0, 2], sizes = [128, 1], strides = [1, 1]} : vector<128x3xf32> to vector<128x1xf32>
    %19 = vector.extract_strided_slice %3 {offsets = [2, 0], sizes = [1, 128], strides = [1, 1]} : vector<3x128xf32> to vector<1x128xf32>
    %20 = vector.broadcast %18 : vector<128x1xf32> to vector<128x128xf32>
    %21 = vector.broadcast %19 : vector<1x128xf32> to vector<128x128xf32>
    %22 = arith.subf %20, %21 : vector<128x128xf32>
    %23 = arith.mulf %22, %22 : vector<128x128xf32>
    %24 = arith.addf %17, %23 : vector<128x128xf32>
    %cst = arith.constant 4.000000e-02 : f32
    %25 = vector.broadcast %cst : f32 to vector<128x128xf32>
    %26 = arith.cmpf ole, %24, %25 : vector<128x128xf32>
    %27 = arith.extui %26 : vector<128x128xi1> to vector<128x128xi8>
    %c0_4 = arith.constant 0 : index
    %c0_5 = arith.constant 0 : index
    %28 = vector.load %arg7[%c0_4, %c0_5] : memref<512x128xi8, #tpu.memory_space<vmem>>, vector<128x128xi8>
    tpu.vector_store %arg7[%c0_4, %c0_5], %27 {strides = array<i32>} : memref<512x128xi8, #tpu.memory_space<vmem>>, vector<128x128xi8>,
    %29 = arith.extui %26 : vector<128x128xi1> to vector<128x128xi32>
    %30 = arith.sitofp %29 : vector<128x128xi32> to vector<128x128xf32>
    %31 = arith.truncf %30 : vector<128x128xf32> to vector<128x128xbf16>
    %c0_6 = arith.constant 0 : index
    %c0_7 = arith.constant 0 : index
    %32 = vector.load %arg9[%c0_6, %c0_7] : memref<512x128xbf16, #tpu.memory_space<vmem>>, vector<128x128xbf16>
    tpu.vector_store %arg9[%c0_6, %c0_7], %31 {strides = array<i32>} : memref<512x128xbf16, #tpu.memory_space<vmem>>, vector<128x128xbf16>,
    %c128 = arith.constant 128 : index
    %c0_8 = arith.constant 0 : index
    %33 = vector.load %arg2[%c128, %c0_8] : memref<512x3xf32, #tpu.memory_space<vmem>>, vector<128x3xf32>
    %34 = vector.extract_strided_slice %33 {offsets = [0, 0], sizes = [128, 1], strides = [1, 1]} : vector<128x3xf32> to vector<128x1xf32>
    %35 = vector.extract_strided_slice %3 {offsets = [0, 0], sizes = [1, 128], strides = [1, 1]} : vector<3x128xf32> to vector<1x128xf32>
    %36 = vector.broadcast %34 : vector<128x1xf32> to vector<128x128xf32>
    %37 = vector.broadcast %35 : vector<1x128xf32> to vector<128x128xf32>
    %38 = arith.subf %36, %37 : vector<128x128xf32>
    %39 = arith.mulf %38, %38 : vector<128x128xf32>
    %40 = vector.extract_strided_slice %33 {offsets = [0, 1], sizes = [128, 1], strides = [1, 1]} : vector<128x3xf32> to vector<128x1xf32>
    %41 = vector.extract_strided_slice %3 {offsets = [1, 0], sizes = [1, 128], strides = [1, 1]} : vector<3x128xf32> to vector<1x128xf32>
    %42 = vector.broadcast %40 : vector<128x1xf32> to vector<128x128xf32>
    %43 = vector.broadcast %41 : vector<1x128xf32> to vector<128x128xf32>
    %44 = arith.subf %42, %43 : vector<128x128xf32>
    %45 = arith.mulf %44, %44 : vector<128x128xf32>
    %46 = arith.addf %39, %45 : vector<128x128xf32>
    %47 = vector.extract_strided_slice %33 {offsets = [0, 2], sizes = [128, 1], strides = [1, 1]} : vector<128x3xf32> to vector<128x1xf32>
    %48 = vector.extract_strided_slice %3 {offsets = [2, 0], sizes = [1, 128], strides = [1, 1]} : vector<3x128xf32> to vector<1x128xf32>
    %49 = vector.broadcast %47 : vector<128x1xf32> to vector<128x128xf32>
    %50 = vector.broadcast %48 : vector<1x128xf32> to vector<128x128xf32>
    %51 = arith.subf %49, %50 : vector<128x128xf32>
    %52 = arith.mulf %51, %51 : vector<128x128xf32>
    %53 = arith.addf %46, %52 : vector<128x128xf32>
    %cst_9 = arith.constant 4.000000e-02 : f32
    %54 = vector.broadcast %cst_9 : f32 to vector<128x128xf32>
    %55 = arith.cmpf ole, %53, %54 : vector<128x128xf32>
    %56 = arith.extui %55 : vector<128x128xi1> to vector<128x128xi8>
    %c128_10 = arith.constant 128 : index
    %c0_11 = arith.constant 0 : index
    %57 = vector.load %arg7[%c128_10, %c0_11] : memref<512x128xi8, #tpu.memory_space<vmem>>, vector<128x128xi8>
    tpu.vector_store %arg7[%c128_10, %c0_11], %56 {strides = array<i32>} : memref<512x128xi8, #tpu.memory_space<vmem>>, vector<128x128xi8>,
    %58 = arith.extui %55 : vector<128x128xi1> to vector<128x128xi32>
    %59 = arith.sitofp %58 : vector<128x128xi32> to vector<128x128xf32>
    %60 = arith.truncf %59 : vector<128x128xf32> to vector<128x128xbf16>
    %c128_12 = arith.constant 128 : index
    %c0_13 = arith.constant 0 : index
    %61 = vector.load %arg9[%c128_12, %c0_13] : memref<512x128xbf16, #tpu.memory_space<vmem>>, vector<128x128xbf16>
    tpu.vector_store %arg9[%c128_12, %c0_13], %60 {strides = array<i32>} : memref<512x128xbf16, #tpu.memory_space<vmem>>, vector<128x128xbf16>,
    %c256 = arith.constant 256 : index
    %c0_14 = arith.constant 0 : index
    %62 = vector.load %arg2[%c256, %c0_14] : memref<512x3xf32, #tpu.memory_space<vmem>>, vector<128x3xf32>
    %63 = vector.extract_strided_slice %62 {offsets = [0, 0], sizes = [128, 1], strides = [1, 1]} : vector<128x3xf32> to vector<128x1xf32>
    %64 = vector.extract_strided_slice %3 {offsets = [0, 0], sizes = [1, 128], strides = [1, 1]} : vector<3x128xf32> to vector<1x128xf32>
    %65 = vector.broadcast %63 : vector<128x1xf32> to vector<128x128xf32>
    %66 = vector.broadcast %64 : vector<1x128xf32> to vector<128x128xf32>
    %67 = arith.subf %65, %66 : vector<128x128xf32>
    %68 = arith.mulf %67, %67 : vector<128x128xf32>
    %69 = vector.extract_strided_slice %62 {offsets = [0, 1], sizes = [128, 1], strides = [1, 1]} : vector<128x3xf32> to vector<128x1xf32>
    %70 = vector.extract_strided_slice %3 {offsets = [1, 0], sizes = [1, 128], strides = [1, 1]} : vector<3x128xf32> to vector<1x128xf32>
    %71 = vector.broadcast %69 : vector<128x1xf32> to vector<128x128xf32>
    %72 = vector.broadcast %70 : vector<1x128xf32> to vector<128x128xf32>
    %73 = arith.subf %71, %72 : vector<128x128xf32>
    %74 = arith.mulf %73, %73 : vector<128x128xf32>
    %75 = arith.addf %68, %74 : vector<128x128xf32>
    %76 = vector.extract_strided_slice %62 {offsets = [0, 2], sizes = [128, 1], strides = [1, 1]} : vector<128x3xf32> to vector<128x1xf32>
    %77 = vector.extract_strided_slice %3 {offsets = [2, 0], sizes = [1, 128], strides = [1, 1]} : vector<3x128xf32> to vector<1x128xf32>
    %78 = vector.broadcast %76 : vector<128x1xf32> to vector<128x128xf32>
    %79 = vector.broadcast %77 : vector<1x128xf32> to vector<128x128xf32>
    %80 = arith.subf %78, %79 : vector<128x128xf32>
    %81 = arith.mulf %80, %80 : vector<128x128xf32>
    %82 = arith.addf %75, %81 : vector<128x128xf32>
    %cst_15 = arith.constant 4.000000e-02 : f32
    %83 = vector.broadcast %cst_15 : f32 to vector<128x128xf32>
    %84 = arith.cmpf ole, %82, %83 : vector<128x128xf32>
    %85 = arith.extui %84 : vector<128x128xi1> to vector<128x128xi8>
    %c256_16 = arith.constant 256 : index
    %c0_17 = arith.constant 0 : index
    %86 = vector.load %arg7[%c256_16, %c0_17] : memref<512x128xi8, #tpu.memory_space<vmem>>, vector<128x128xi8>
    tpu.vector_store %arg7[%c256_16, %c0_17], %85 {strides = array<i32>} : memref<512x128xi8, #tpu.memory_space<vmem>>, vector<128x128xi8>,
    %87 = arith.extui %84 : vector<128x128xi1> to vector<128x128xi32>
    %88 = arith.sitofp %87 : vector<128x128xi32> to vector<128x128xf32>
    %89 = arith.truncf %88 : vector<128x128xf32> to vector<128x128xbf16>
    %c256_18 = arith.constant 256 : index
    %c0_19 = arith.constant 0 : index
    %90 = vector.load %arg9[%c256_18, %c0_19] : memref<512x128xbf16, #tpu.memory_space<vmem>>, vector<128x128xbf16>
    tpu.vector_store %arg9[%c256_18, %c0_19], %89 {strides = array<i32>} : memref<512x128xbf16, #tpu.memory_space<vmem>>, vector<128x128xbf16>,
    %c384 = arith.constant 384 : index
    %c0_20 = arith.constant 0 : index
    %91 = vector.load %arg2[%c384, %c0_20] : memref<512x3xf32, #tpu.memory_space<vmem>>, vector<128x3xf32>
    %92 = vector.extract_strided_slice %91 {offsets = [0, 0], sizes = [128, 1], strides = [1, 1]} : vector<128x3xf32> to vector<128x1xf32>
    %93 = vector.extract_strided_slice %3 {offsets = [0, 0], sizes = [1, 128], strides = [1, 1]} : vector<3x128xf32> to vector<1x128xf32>
    %94 = vector.broadcast %92 : vector<128x1xf32> to vector<128x128xf32>
    %95 = vector.broadcast %93 : vector<1x128xf32> to vector<128x128xf32>
    %96 = arith.subf %94, %95 : vector<128x128xf32>
    %97 = arith.mulf %96, %96 : vector<128x128xf32>
    %98 = vector.extract_strided_slice %91 {offsets = [0, 1], sizes = [128, 1], strides = [1, 1]} : vector<128x3xf32> to vector<128x1xf32>
    %99 = vector.extract_strided_slice %3 {offsets = [1, 0], sizes = [1, 128], strides = [1, 1]} : vector<3x128xf32> to vector<1x128xf32>
    %100 = vector.broadcast %98 : vector<128x1xf32> to vector<128x128xf32>
    %101 = vector.broadcast %99 : vector<1x128xf32> to vector<128x128xf32>
    %102 = arith.subf %100, %101 : vector<128x128xf32>
    %103 = arith.mulf %102, %102 : vector<128x128xf32>
    %104 = arith.addf %97, %103 : vector<128x128xf32>
    %105 = vector.extract_strided_slice %91 {offsets = [0, 2], sizes = [128, 1], strides = [1, 1]} : vector<128x3xf32> to vector<128x1xf32>
    %106 = vector.extract_strided_slice %3 {offsets = [2, 0], sizes = [1, 128], strides = [1, 1]} : vector<3x128xf32> to vector<1x128xf32>
    %107 = vector.broadcast %105 : vector<128x1xf32> to vector<128x128xf32>
    %108 = vector.broadcast %106 : vector<1x128xf32> to vector<128x128xf32>
    %109 = arith.subf %107, %108 : vector<128x128xf32>
    %110 = arith.mulf %109, %109 : vector<128x128xf32>
    %111 = arith.addf %104, %110 : vector<128x128xf32>
    %cst_21 = arith.constant 4.000000e-02 : f32
    %112 = vector.broadcast %cst_21 : f32 to vector<128x128xf32>
    %113 = arith.cmpf ole, %111, %112 : vector<128x128xf32>
    %114 = arith.extui %113 : vector<128x128xi1> to vector<128x128xi8>
    %c384_22 = arith.constant 384 : index
    %c0_23 = arith.constant 0 : index
    %115 = vector.load %arg7[%c384_22, %c0_23] : memref<512x128xi8, #tpu.memory_space<vmem>>, vector<128x128xi8>
    tpu.vector_store %arg7[%c384_22, %c0_23], %114 {strides = array<i32>} : memref<512x128xi8, #tpu.memory_space<vmem>>, vector<128x128xi8>,
    %116 = arith.extui %113 : vector<128x128xi1> to vector<128x128xi32>
    %117 = arith.sitofp %116 : vector<128x128xi32> to vector<128x128xf32>
    %118 = arith.truncf %117 : vector<128x128xf32> to vector<128x128xbf16>
    %c384_24 = arith.constant 384 : index
    %c0_25 = arith.constant 0 : index
    %119 = vector.load %arg9[%c384_24, %c0_25] : memref<512x128xbf16, #tpu.memory_space<vmem>>, vector<128x128xbf16>
    tpu.vector_store %arg9[%c384_24, %c0_25], %118 {strides = array<i32>} : memref<512x128xbf16, #tpu.memory_space<vmem>>, vector<128x128xbf16>,
    %c0_26 = arith.constant 0 : index
    %c0_27 = arith.constant 0 : index
    %120 = vector.load %arg8[%c0_26, %c0_27] : memref<9x128xf32, #tpu.memory_space<vmem>>, vector<9x128xf32>
    %c0_28 = arith.constant 0 : index
    %c0_29 = arith.constant 0 : index
    %121 = vector.load %arg4[%c0_28, %c0_29] : memref<9x512xbf16, #tpu.memory_space<vmem>>, vector<9x512xbf16>
    %c0_30 = arith.constant 0 : index
    %c0_31 = arith.constant 0 : index
    %122 = vector.load %arg9[%c0_30, %c0_31] : memref<512x128xbf16, #tpu.memory_space<vmem>>, vector<512x128xbf16>
    %cst_32 = arith.constant dense<0.000000e+00> : vector<9x128xf32>
    %123 = tpu.matmul %121, %122, %cst_32 {dimension_numbers = #tpu.dot_dimension_numbers<[1], [0], [0], [1], [0, 0, 1, 1], [], []>} : vector<9x512xbf16>, vector<512x128xbf16>, vector<9x128xf32> -> vector<9x128xf32>
    %124 = arith.addf %120, %123 : vector<9x128xf32>
    %c0_33 = arith.constant 0 : index
    %c0_34 = arith.constant 0 : index
    %125 = vector.load %arg8[%c0_33, %c0_34] : memref<9x128xf32, #tpu.memory_space<vmem>>, vector<9x128xf32>
    tpu.vector_store %arg8[%c0_33, %c0_34], %124 {strides = array<i32>} : memref<9x128xf32, #tpu.memory_space<vmem>>, vector<9x128xf32>,
    %c1_i32 = arith.constant 1 : i32
    %126 = arith.cmpi eq, %arg1, %c1_i32 : i32
    %127 = arith.extui %126 : i1 to i32
    %c0_i32_35 = arith.constant 0 : i32
    %128 = arith.cmpi ne, %127, %c0_i32_35 : i32
    scf.if %128 {
      %c0_36 = arith.constant 0 : index
      %c0_37 = arith.constant 0 : index
      %129 = vector.load %arg8[%c0_36, %c0_37] : memref<9x128xf32, #tpu.memory_space<vmem>>, vector<9x128xf32>
      %130 = vector.extract_strided_slice %129 {offsets = [8, 0], sizes = [1, 128], strides = [1, 1]} : vector<9x128xf32> to vector<1x128xf32>
      %cst_38 = arith.constant 1.000000e+00 : f32
      %131 = vector.broadcast %cst_38 : f32 to vector<1x128xf32>
      %132 = arith.maximumf %130, %131 : vector<1x128xf32>
      %cst_39 = arith.constant 1.000000e+00 : f32
      %133 = vector.broadcast %cst_39 : f32 to vector<1x128xf32>
      %134 = arith.divf %133, %132 : vector<1x128xf32>
      %c0_40 = arith.constant 0 : index
      %c0_41 = arith.constant 0 : index
      %135 = vector.load %arg5[%c0_40, %c0_41] : memref<128x9xf32, #tpu.memory_space<vmem>>, vector<128x9xf32>
      %136 = vector.broadcast %134 : vector<1x128xf32> to vector<9x128xf32>
      %137 = arith.mulf %129, %136 : vector<9x128xf32>
      %cst_42 = arith.constant dense<0.000000e+00> : vector<128x128xf32>
      %138 = tpu.matmul %135, %137, %cst_42 {dimension_numbers = #tpu.dot_dimension_numbers<[1], [0], [0], [1], [0, 0, 1, 1], [], []>} : vector<128x9xf32>, vector<9x128xf32>, vector<128x128xf32> -> vector<128x128xf32>
      %c0_43 = arith.constant 0 : index
      %c0_44 = arith.constant 0 : index
      %139 = vector.load %arg6[%c0_43, %c0_44] : memref<128x128xf32, #tpu.memory_space<vmem>>, vector<128x128xf32>
      tpu.vector_store %arg6[%c0_43, %c0_44], %138 {strides = array<i32>} : memref<128x128xf32, #tpu.memory_space<vmem>>, vector<128x128xf32>,
    } else {
    }
    return
  }
  func.func @transform_0(%arg0: i32, %arg1: i32) -> (i32, i32) {
    %c0_i32 = arith.constant 0 : i32
    %c0_i32_0 = arith.constant 0 : i32
    return %arg1, %c0_i32 : i32, i32
  }
  func.func @transform_1(%arg0: i32, %arg1: i32) -> (i32, i32) {
    %c0_i32 = arith.constant 0 : i32
    %c0_i32_0 = arith.constant 0 : i32
    return %c0_i32, %arg0 : i32, i32
  }
  func.func @transform_2(%arg0: i32, %arg1: i32) -> (i32, i32) {
    %c0_i32 = arith.constant 0 : i32
    %c0_i32_0 = arith.constant 0 : i32
    return %c0_i32, %arg1 : i32, i32
  }
  func.func @transform_3(%arg0: i32, %arg1: i32) -> (i32, i32) {
    %c0_i32 = arith.constant 0 : i32
    %c0_i32_0 = arith.constant 0 : i32
    %c0_i32_1 = arith.constant 0 : i32
    return %c0_i32, %c0_i32_0 : i32, i32
  }
  func.func @transform_4(%arg0: i32, %arg1: i32) -> (i32, i32) {
    %c0_i32 = arith.constant 0 : i32
    %c0_i32_0 = arith.constant 0 : i32
    return %c0_i32, %arg0 : i32, i32
  }
  func.func @transform_5(%arg0: i32, %arg1: i32) -> (i32, i32) {
    %c0_i32 = arith.constant 0 : i32
    return %arg1, %arg0 : i32, i32
  }
}

</mosaic_0001>

<bundles_post_ra>
// kernel: tpu_custom_call.1
= control target key start
LH: loop header
LB: loop body
LE: loop exit
PB: predicated region body
PF: predicated region fallthrough
CT: control target
= control target key end

     0   :  { %s5016_s0 = inlined_call_operand.vmem [shape: f32[1024,3], index: 0, kind: input, shape index: {}]   ;;  %s5017_s1 = inlined_call_operand.vmem [shape: f32[3,384], index: 1, kind: input, shape index: {}]   ;;  %s5018_s2 = inlined_call_operand.vmem [shape: bf16[9,1024], index: 2, kind: input, shape index: {}]   ;;  %s5019_s3 = inlined_call_operand.vmem [shape: f32[128,9], index: 3, kind: input, shape index: {}]   ;;  %s5020_s4 = inlined_call_operand.hbm [shape: f32[128,384], index: 4, kind: output, shape index: {0}]   ;;  %s5021_s5 = inlined_call_operand.hbm [shape: s8[1024,384], index: 5, kind: output, shape index: {1}]  }
   0x1   :  { %5045 = sst [smem:[#allocation93_spill]] %s5018_s2 }
   0x2   :  { %11 = vsyncpa [#allocation6], 0 }
   0x3   :  { %13 = vsyncpa [#allocation6 + $0x1], 0 }
   0x4   :  { %14 = vsyncpa [#allocation8], 0 }
   0x5   :  { %16 = vsyncpa [#allocation8 + $0x1], 0  ;;  %s3303_s18 = smov 0   ;;  %s3305_s19 = smov 0  }
   0x6   :  { %s3307_s20 = smov 0   ;;  %s3309_s21 = smov 0  }
   0x7   :  { %s3311_s22 = smov 0   ;;  %s3313_s23 = smov 0  }
   0x8   :  { %s3315_s24 = smov 0   ;;  %s3317_s25 = smov 0  }
   0x9   :  { %s3319_s26 = smov 0   ;;  %s3321_s27 = smov 0  }
   0xa   :  { %s3323_s28 = smov 0   ;;  %s3325_s29 = smov 0  }
   0xb   :  { %s3327_s30 = smov 0  }
   0xc LB: > { %5046 = sst [smem:[#allocation11_spill]] %s3220_s20  ;;  %s2643_s6 = sadd.s32 4294967295, %s3260_s30   ;;  %s3260_s30 = sphi %s3327_s30, %s22_s30   ;;  %s3256_s29 = sphi %s3325_s29, %s5281_s29   ;;  %s3252_s28 = sphi %s3323_s28, %s5280_s28   ;;  %s3248_s27 = sphi %s3321_s27, %s5279_s27   ;;  %s3244_s26 = sphi %s3319_s26, %s5278_s26   ;;  %s3240_s25 = sphi %s3317_s25, %s5277_s25   ;;  %s3236_s24 = sphi %s3315_s24, %s5276_s24   ;;  %s3232_s23 = sphi %s3313_s23, %s5275_s23   ;;  %s3228_s22 = sphi %s3311_s22, %s5285_s22   ;;  %s3224_s21 = sphi %s3309_s21, %s5284_s21   ;;  %s3220_s20 = sphi %s3307_s20, %s5273_s20   ;;  %s3216_s19 = sphi %s3305_s19, %s5283_s19   ;;  %s3212_s18 = sphi %s3303_s18, %s5282_s18  }
   0xd   : > { %5047 = sst [smem:[#allocation12_spill]] %s3232_s23  ;;  %s2644_s7 = sadd.s32 4294967294, %s3260_s30  }
   0xe   : > { %5048 = sst [smem:[#allocation13_spill]] %s3240_s25  ;;  %s31_s8 = sadd.s32 1, %s3252_s28 }
   0xf   : > { %5049 = sst [smem:[#allocation14_spill]] %s3252_s28  ;;  %s34_s9 = sadd.s32 1, %s3256_s29 }
  0x10   : > { %5050 = sst [smem:[#allocation15_spill]] %s3256_s29  ;;  %p32_p0 = scmp.ge.s32.totalorder %s31_s8, 2 }
  0x11   : > { %s93_s10 = sadd.s32 1, %s3240_s25  ;;  %p100_p1 = scmp.ne.s32.totalorder %s3240_s25, %s3236_s24 }
  0x12   : > { %p101_p2 = scmp.eq.s32.totalorder %s3260_s30, 0  ;;  %s5287_s8 = smov (%p32_p0, %s31_s8), 0 }
  0x13   : > { %5051 = sst [smem:[#allocation16_spill]] %s5287_s8  ;;  %s5289_s9 = smov (!%p32_p0, %s34_s9), %s3256_s29 }
  0x14   : > { %s90_s11 = ssub.s32 %s3252_s28, %s5287_s8  ;;  %p3381_p3 = por %p101_p2, %p100_p1 }
  0x15   : > { %p36_p4 = scmp.ge.s32.totalorder %s5289_s9, 3  ;;  %p91_p5 = scmp.eq.s32.totalorder %s90_s11, 0 }
  0x16   : > { %s140_s13 = sadd.s32 1, %s3232_s23  ;;  %p150_p6 = scmp.ne.s32.totalorder %s3232_s23, %s3228_s22 }
  0x17   : > { %s5291_s9 = smov (%p36_p4, %s5289_s9), 0  ;;  %p3395_p7 = scmp.eq.s32.totalorder %s2643_s6, 5 }
  0x18   : > { %5053 = sst [smem:[#allocation17_spill]] %s5291_s9  ;;  %s137_s15 = ssub.s32 %s3256_s29, %s5291_s9 }
  0x19   : > { %s3391_s14 = scalar_select %p91_p5, %s3240_s25, %s93_s10  }
  0x1a   : > { %p138_p8 = scmp.eq.s32.totalorder %s137_s15, 0  ;;  %p156_p9 = scmp.ne.s32.totalorder %s3228_s22, %s3224_s21 }
  0x1b   : > { %5054 = sst [smem:[#allocation18_spill]] %s3391_s14  ;;  %p3403_p10 = por %p3395_p7, %p150_p6 }
  0x1c   : > { %p157_p11 = scmp.eq.s32.totalorder %s2644_s7, 5  ;;  %s165_s6 = sor.u32 %s137_s15, %s90_s11 }
  0x1d   : > { %s3408_s8 = scalar_select %p138_p8, %s3232_s23, %s140_s13  }
  0x1e   : > { %p3410_p12 = por %p157_p11, %p156_p9  ;;  %p166_p13 = scmp.eq.s32.totalorder %s165_s6, 0 }
  0x1f   : > { %5057 = sst [smem:[#allocation19_spill]] %s3408_s8  ;;  %s168_s9 = sadd.s32 1, %s3220_s20 }
  0x20   : > { %p178_p0 = scmp.ne.s32.totalorder %s3220_s20, %s3216_s19  ;;  %p184_p1 = scmp.ne.s32.totalorder %s3216_s19, %s3212_s18 }
  0x21   : > { %s3420_s29 = scalar_select %p166_p13, %s3220_s20, %s168_s9  }
  0x22   : > { %p3424_p2 = por %p178_p0, %p3395_p7  ;;  %p3428_p4 = por %p184_p1, %p157_p11 }
  0x23   : > { %5059 = sst [smem:[#allocation20_spill]] %s3420_s29  ;;  %p2646_p5 = scmp.ge.s32.totalorder %s3260_s30, 6 }
  0x24   : > { %s5061_s7 = scalar_select %p3428_p4, 1, 0 }
  0x25   : > { %204 = sbr.rel (%p2646_p5) target bundleno = 56 (0x38), region = 20 }
  0x26   : > { %5062 = sst [smem:[#allocation21_spill]] %s5061_s7 }
  0x2c   : > { %223 = sbr.rel (!%p3381_p3) target bundleno = 56 (0x38), region = 32  ;;  %s225_s11 = sand.u32 (%p3381_p3), 1, %s3240_s25  }
  0x2d   : > { %s2752_s9 = sshll.u32 (%p3381_p3), %s3252_s28, 4  ;;  %s2647_s13 = sshll.u32 (%p3381_p3), %s225_s11, 5 }
  0x2e   : > { %s5063_s2 = sld [smem:[#allocation93_spill]] (%p3381_p3)  ;;  %s227_s8 = scalar_lea.vmem (%p3381_p3), [#allocation4], %s2647_s13 }
  0x34   : > { %s230_s6 = scalar_lea.vmem %s5063_s2, %s2752_s9 }
  0x35   : > { %v243_v0 = vld [vmem:[%s230_s6] sm:$0xff]  ;;  %v245_v1 = vld [vmem:[%s230_s6 + $0x8] sm:$0xff] }
  0x36   : > { %v247_v2 = vld [vmem:[%s230_s6 + $0x20] sm:$0xff]  ;;  %244 = vst [vmem:[%s227_s8] sm:$0xff] %v243_v0  ;;  %246 = vst [vmem:[%s227_s8 + $0x8] sm:$0xff] %v245_v1  ;;  %v249_v3 = vld [vmem:[%s230_s6 + $0x28] sm:$0xff] }
  0x37   : > { %248 = vst [vmem:[%s227_s8 + $0x10] sm:$0xff] %v247_v2  ;;  %250 = vst [vmem:[%s227_s8 + $0x18] sm:$0xff] %v249_v3 }
  0x38 PF: > { %p2650_p3 = scmp.ge.s32.totalorder %s3260_s30, 1  ;;  %p255_p6 = scmp.lt.s32.totalorder %s3260_s30, 7 }
  0x3a   : > { %p256_p7 = pnand %p2650_p3, %p255_p6 }
  0x3c   : > { %259 = sbr.rel (%p256_p7) target bundleno = 1223 (0x4c7), region = 55 }
  0x43   : > { %s262_s12 = sand.u32 1, %s3236_s24   ;;  %s5029_s11 = sand.u32 1, %s3228_s22  }
  0x44   : > { %s2651_s9 = sshll.u32 %s262_s12, 5  ;;  %s2652_s8 = sshll.u32 %s5029_s11, 7 }
  0x45   : > { %s5031_s13 = sand.u32 1, %s3216_s19   ;;  %s2654_s15 = sshll.u32 %s3244_s26, 6 }
  0x46   : > { %s2653_s16 = sshll.u32 %s5031_s13, 7  ;;  %p304_p8 = scmp.lt.s32.totalorder %s2654_s15, 127 }
  0x47   : > { %p309_p9 = scmp.lt.s32.totalorder %s3248_s27, 2  ;;  %s3462_s11 = scalar_lea.vmem [#allocation4], %s2651_s9 }
  0x48   : > { %s5293_s15 = smov (!%p304_p8, %s2654_s15), 127  ;;  %s3464_s7 = scalar_lea.vmem [#allocation5], %s2652_s8 }
  0x49   : > { %s310_s6 = scalar_select %p309_p9, %s3248_s27, 2 }
  0x4a   : > { %s2655_s2 = sshll.u32 %s5293_s15, 3  ;;  %s3466_s13 = scalar_lea.vmem [#allocation7], %s2653_s16 }
  0x4b   : > { %s3455_s23 = scalar_lea.vmem %s5016_s0, %s2655_s2  ;;  %s2656_s29 = sshll.u32 %s310_s6, 2 }
  0x4c   : > { %s3460_s12 = scalar_lea.vmem %s5017_s1, %s2656_s29  ;;  %p2657_p11 = scmp.ne.s32.totalorder %s3244_s26, 0 }
  0x4d   : > { %v3262_v4 = vmov (!%p2657_p11), 0.0  }
  0x4e   : > { %321 = sbr.rel (%p2657_p11) target bundleno = 85 (0x55), region = 63  ;;  %322 = vst [vmem:[#allocation2] sm:$0xff] (!%p2657_p11), %v3262_v4  ;;  %323 = vst [vmem:[#allocation2 + $0x8] sm:$0x1] (!%p2657_p11), %v3262_v4 }
  0x55 PF: > { %v3470_v5 = vld [vmem:[%s3455_s23 + $0x10] sm:$0xff]  ;;  %v3473_v6 = vld [vmem:[%s3455_s23] sm:$0xff]  ;;  %v5034_v7 = vmov 0   ;;  %v3480_v8 = vld [vmem:[%s3455_s23 + $0x18] sm:$0xff]  ;;  %v5032_v23 = vmov 1   ;;  %v5036_v32 = vmov 2  }
  0x56   : > { %3042 = vset.pattern.permute.xlu1 %v5034_v7  ;;  %3041 = vset.pattern.permute.xlu0 %v5034_v7  ;;  %v3483_v9 = vld [vmem:[%s3455_s23 + $0x8] sm:$0xff]  ;;  %v3491_v11 = vld [vmem:[%s3455_s23 + $0x20] sm:$0xff]  ;;  %v3496_v12 = vld [vmem:[%s3455_s23 + $0x38] sm:$0xff]  ;;  %p2726_p13 = scmp.ne.s32.totalorder %s3244_s26, 1 }
  0x57   : > { %353 = vperm.xlu1 %3042, %v3470_v5   ;;  %343 = vperm.xlu0 %3041, %v3473_v6   ;;  %v3488_v10 = vld [vmem:[%s3455_s23 + $0x28] sm:$0xff]  ;;  %v3499_v13 = vld [vmem:[%s3455_s23 + $0x30] sm:$0xff]  ;;  %v3507_v15 = vld [vmem:[%s3455_s23 + $0x40] sm:$0xff] }
  0x58   : > { %v3504_v14 = vld [vmem:[%s3455_s23 + $0x48] sm:$0xff]  ;;  %v3512_v16 = vld [vmem:[%s3455_s23 + $0x58] sm:$0xff]  ;;  %v3515_v17 = vld [vmem:[%s3455_s23 + $0x50] sm:$0xff] }
  0x59   : > { %v3520_v18 = vld [vmem:[%s3455_s23 + $0x68] sm:$0xff]  ;;  %v3523_v19 = vld [vmem:[%s3455_s23 + $0x60] sm:$0xff]  ;;  %v3528_v20 = vld [vmem:[%s3455_s23 + $0x78] sm:$0xff] }
  0x5a   : > { %v3531_v21 = vld [vmem:[%s3455_s23 + $0x70] sm:$0xff]  ;;  %v3536_v22 = vld [vmem:[%s3455_s23 + $0x80] sm:$0xff]  ;;  %v3542_v24 = vld [vmem:[%s3455_s23 + $0x98] sm:$0xff] }
  0x5b   : > { %358 = vperm.xlu1 %3042, %v3480_v8   ;;  %348 = vperm.xlu0 %3041, %v3483_v9   ;;  %v3547_v25 = vld [vmem:[%s3455_s23 + $0xa8] sm:$0xff]  ;;  %v3552_v26 = vld [vmem:[%s3455_s23 + $0xb8] sm:$0xff]  ;;  %v3582_v33 = vld [vmem:[%s3455_s23 + $0x120] sm:$0xff] }
  0x5c   : > { %v3557_v27 = vld [vmem:[%s3455_s23 + $0xc8] sm:$0xff]  ;;  %v3562_v28 = vld [vmem:[%s3455_s23 + $0xd8] sm:$0xff]  ;;  %v3587_v34 = vld [vmem:[%s3455_s23 + $0x130] sm:$0xff] }
  0x5d   : > { %v3567_v29 = vld [vmem:[%s3455_s23 + $0xe8] sm:$0xff]  ;;  %v3572_v30 = vld [vmem:[%s3455_s23 + $0xf8] sm:$0xff]  ;;  %v3592_v35 = vld [vmem:[%s3455_s23 + $0x140] sm:$0xff] }
  0x5e   : > { %v3577_v31 = vld [vmem:[%s3455_s23 + $0x108] sm:$0xff]  ;;  %5064 = vst [vmem:[#allocation22_spill] sm:$0xff] %v3592_v35  ;;  %v1219_v36 = vld [vmem:[%s3455_s23 + $0x150] sm:$0xff]  ;;  %v3599_v37 = vld [vmem:[%s3455_s23 + $0x160] sm:$0xff] }
  0x5f   : > { %368 = vperm.xlu1 %3042, %v3488_v10   ;;  %363 = vperm.xlu0 %3041, %v3491_v11   ;;  %v3604_v38 = vld [vmem:[%s3455_s23 + $0x180] sm:$0xff]  ;;  %v3609_v39 = vld [vmem:[%s3455_s23 + $0x190] sm:$0xff]  ;;  %v3614_v40 = vld [vmem:[%s3455_s23 + $0x1a8] sm:$0xff] }
  0x60   : > { %v3619_v41 = vld [vmem:[%s3455_s23 + $0x1b0] sm:$0xff]  ;;  %v3624_v42 = vld [vmem:[%s3455_s23 + $0x88] sm:$0xff]  ;;  %v3641_v46 = vld [vmem:[%s3455_s23 + $0xa0] sm:$0xff] }
  0x61   : > { %v3627_v43 = vld [vmem:[%s3455_s23 + $0x1c8] sm:$0xff]  ;;  %v3633_v44 = vld [vmem:[%s3455_s23 + $0x90] sm:$0xff]  ;;  %v3657_v50 = vld [vmem:[%s3455_s23 + $0xc0] sm:$0xff] }
  0x62   : > { %v3636_v45 = vld [vmem:[%s3455_s23 + $0x1d0] sm:$0xff]  ;;  %v3644_v47 = vld [vmem:[%s3455_s23 + $0x1e8] sm:$0xff]  ;;  %v3667_v52 = vld [vmem:[%s3455_s23 + $0xe0] sm:$0xff] }
  0x63   : > { %378 = vperm.xlu1 %3042, %v3496_v12   ;;  %373 = vperm.xlu0 %3041, %v3499_v13   ;;  %v3649_v48 = vld [vmem:[%s3455_s23 + $0xb0] sm:$0xff] }
  0x64   : > { %v3652_v49 = vld [vmem:[%s3455_s23 + $0x1f0] sm:$0xff] }
  0x65   : > { %v3662_v51 = vld [vmem:[%s3455_s23 + $0xd0] sm:$0xff] }
  0x66   : > { %v3676_v55 = vld [vmem:[%s3455_s23 + $0xf0] sm:$0xff] }
  0x67   : > { %388 = vperm.xlu1 %3042, %v3504_v14   ;;  %383 = vperm.xlu0 %3041, %v3507_v15  }
  0x6b   : > { %398 = vperm.xlu1 %3042, %v3512_v16   ;;  %393 = vperm.xlu0 %3041, %v3515_v17  }
  0x6f   : > { %408 = vperm.xlu1 %3042, %v3520_v18   ;;  %403 = vperm.xlu0 %3041, %v3523_v19  }
  0x73   : > { %418 = vperm.xlu1 %3042, %v3528_v20   ;;  %413 = vperm.xlu0 %3041, %v3531_v21  }
  0x77   : > { %3043 = vset.pattern.permute.xlu1 %v5032_v23  ;;  %791 = vperm.xlu0 %3041, %v3536_v22  }
  0x78   : > { %462 = vperm.xlu1 %3043, %v3483_v9  }
  0x7b   : > { %806 = vperm.xlu0 %3041, %v3542_v24  }
  0x7c   : > { %466 = vperm.xlu1 %3043, %v3470_v5  }
  0x7f   : > { %816 = vperm.xlu0 %3041, %v3547_v25  }
  0x80   : > { %474 = vperm.xlu1 %3043, %v3491_v11  }
  0x83   : > { %826 = vperm.xlu0 %3041, %v3552_v26  }
  0x84   : > { %482 = vperm.xlu1 %3043, %v3499_v13  }
  0x87   : > { %836 = vperm.xlu0 %3041, %v3557_v27  }
  0x88   : > { %490 = vperm.xlu1 %3043, %v3507_v15  }
  0x8b   : > { %846 = vperm.xlu0 %3041, %v3562_v28  }
  0x8c   : > { %498 = vperm.xlu1 %3043, %v3515_v17  }
  0x8f   : > { %856 = vperm.xlu0 %3041, %v3567_v29  }
  0x90   : > { %506 = vperm.xlu1 %3043, %v3523_v19  }
  0x93   : > { %866 = vperm.xlu0 %3041, %v3572_v30  }
  0x94   : > { %514 = vperm.xlu1 %3043, %v3531_v21  }
  0x97   : > { %1232 = vperm.xlu0 %3041, %v3577_v31  }
  0x98   : > { %3044 = vset.pattern.permute.xlu1 %v5036_v32 }
  0x99   : > { %574 = vperm.xlu1 %3044, %v3473_v6  }
  0x9b   : > { %1247 = vperm.xlu0 %3041, %v3582_v33  }
  0x9d   : > { %582 = vperm.xlu1 %3044, %v3470_v5  }
  0x9f   : > { %1257 = vperm.xlu0 %3041, %v3587_v34  }
  0xa1   : > { %586 = vperm.xlu1 %3044, %v3480_v8  }
  0xa3   : > { %1267 = vperm.xlu0 %3041, %v3592_v35  }
  0xa5   : > { %594 = vperm.xlu1 %3044, %v3488_v10  }
  0xa7   : > { %1277 = vperm.xlu0 %3041, %v1219_v36  }
  0xa9   : > { %602 = vperm.xlu1 %3044, %v3496_v12  }
  0xab   : > { %1287 = vperm.xlu0 %3041, %v3599_v37  }
  0xad   : > { %610 = vperm.xlu1 %3044, %v3504_v14  }
  0xaf   : > { %1663 = vperm.xlu0 %3041, %v3604_v38  }
  0xb1   : > { %618 = vperm.xlu1 %3044, %v3512_v16  }
  0xb3   : > { %1673 = vperm.xlu0 %3041, %v3609_v39  }
  0xb5   : > { %626 = vperm.xlu1 %3044, %v3520_v18  }
  0xb7   : > { %1688 = vperm.xlu0 %3041, %v3614_v40  }
  0xb9   : > { %634 = vperm.xlu1 %3044, %v3528_v20  }
  0xbb   : > { %1693 = vperm.xlu0 %3041, %v3619_v41  }
  0xbd   : > { %3045 = vset.pattern.permute.xlu1 %v5034_v7 }
  0xbe   : > { %796 = vperm.xlu1 %3045, %v3624_v42  }
  0xbf   : > { %1708 = vperm.xlu0 %3041, %v3627_v43  }
  0xc2   : > { %801 = vperm.xlu1 %3045, %v3633_v44  }
  0xc3   : > { %1713 = vperm.xlu0 %3041, %v3636_v45  }
  0xc6   : > { %811 = vperm.xlu1 %3045, %v3641_v46  }
  0xc7   : > { %1728 = vperm.xlu0 %3041, %v3644_v47  }
  0xca   : > { %821 = vperm.xlu1 %3045, %v3649_v48  }
  0xcb   : > { %1733 = vperm.xlu0 %3041, %v3652_v49  }
  0xce   : > { %831 = vperm.xlu1 %3045, %v3657_v50  }
  0xcf   : > { %3069 = vset.pattern.permute.xlu0 %v5032_v23 }
  0xd0   : > { %458 = vperm.xlu0 %3069, %v3473_v6  }
  0xd2   : > { %841 = vperm.xlu1 %3045, %v3662_v51  }
  0xd4   : > { %470 = vperm.xlu0 %3069, %v3480_v8  }
  0xd6   : > { %v3670_v53 = vpop.permute.xlu1 %353  ;;  %851 = vperm.xlu1 %3045, %v3667_v52   ;;  %v3673_v54 = vpop.permute.xlu0 %343 }
  0xd8   : > { %478 = vperm.xlu0 %3069, %v3488_v10  }
  0xda   : > { %v3679_v56 = vpop.permute.xlu1 %358  ;;  %861 = vperm.xlu1 %3045, %v3676_v55   ;;  %v3682_v57 = vpop.permute.xlu0 %348 }
  0xdc   : > { %486 = vperm.xlu0 %3069, %v3496_v12  }
  0xde   : > { %v3685_v58 = vpop.permute.xlu1 %368  ;;  %3046 = vset.pattern.permute.xlu1 %v5032_v23  ;;  %v3688_v59 = vpop.permute.xlu0 %363 }
  0xdf   : > { %902 = vperm.xlu1 %3046, %v3536_v22  }
  0xe0   : > { %494 = vperm.xlu0 %3069, %v3504_v14  }
  0xe2   : > { %v3692_v60 = vpop.permute.xlu1 %378  ;;  %v3694_v61 = vpop.permute.xlu0 %373 }
  0xe3   : > { %910 = vperm.xlu1 %3046, %v3633_v44  }
  0xe4   : > { %502 = vperm.xlu0 %3069, %v3512_v16  }
  0xe6   : > { %v3698_v62 = vpop.permute.xlu1 %388  ;;  %v3700_v63 = vpop.permute.xlu0 %383 }
  0xe7   : > { %914 = vperm.xlu1 %3046, %v3542_v24  }
  0xe8   : > { %510 = vperm.xlu0 %3069, %v3520_v18  }
  0xea   : > { %v3704_v0 = vpop.permute.xlu1 %398  ;;  %v3706_v1 = vpop.permute.xlu0 %393 }
  0xeb   : > { %922 = vperm.xlu1 %3046, %v3547_v25  }
  0xec   : > { %518 = vperm.xlu0 %3069, %v3528_v20  }
  0xee   : > { %v3710_v2 = vpop.permute.xlu1 %408  ;;  %v3712_v3 = vpop.permute.xlu0 %403 }
  0xef   : > { %930 = vperm.xlu1 %3046, %v3552_v26  }
  0xf0   : > { %906 = vperm.xlu0 %3069, %v3624_v42  }
  0xf2   : > { %v3716_v4 = vpop.permute.xlu1 %418  ;;  %v3718_v5 = vpop.permute.xlu0 %413 }
  0xf3   : > { %938 = vperm.xlu1 %3046, %v3557_v27  }
  0xf4   : > { %918 = vperm.xlu0 %3069, %v3641_v46  }
  0xf6   : > { %v3722_v6 = vpop.permute.xlu0 %791 }
  0xf7   : > { %v3724_v8 = vpop.permute.xlu1 %462  ;;  %946 = vperm.xlu1 %3046, %v3562_v28  }
  0xf8   : > { %926 = vperm.xlu0 %3069, %v3649_v48  }
  0xfa   : > { %v3728_v10 = vpop.permute.xlu0 %806 }
  0xfb   : > { %5065 = vst [vmem:[#allocation23_spill] sm:$0xff] %v3728_v10  ;;  %v3730_v12 = vpop.permute.xlu1 %466  ;;  %954 = vperm.xlu1 %3046, %v3567_v29  }
  0xfc   : > { %934 = vperm.xlu0 %3069, %v3657_v50  }
  0xfe   : > { %v3734_v14 = vpop.permute.xlu0 %816 }
  0xff   : > { %5066 = vst [vmem:[#allocation24_spill] sm:$0xff] %v3734_v14  ;;  %v3736_v16 = vpop.permute.xlu1 %474  ;;  %962 = vperm.xlu1 %3046, %v3572_v30  }
 0x100   : > { %942 = vperm.xlu0 %3069, %v3662_v51  }
 0x102   : > { %v3740_v18 = vpop.permute.xlu0 %826 }
 0x103   : > { %5067 = vst [vmem:[#allocation25_spill] sm:$0xff] %v3740_v18  ;;  %v3742_v20 = vpop.permute.xlu1 %482  ;;  %3047 = vset.pattern.permute.xlu1 %v5036_v32 }
 0x104   : > { %1018 = vperm.xlu1 %3047, %v3624_v42   ;;  %950 = vperm.xlu0 %3069, %v3667_v52  }
 0x106   : > { %v3747_v36 = vpop.permute.xlu0 %836 }
 0x107   : > { %5068 = vst [vmem:[#allocation26_spill] sm:$0xff] %v3747_v36  ;;  %v3749_v23 = vpop.permute.xlu1 %490 }
 0x108   : > { %1022 = vperm.xlu1 %3047, %v3633_v44   ;;  %958 = vperm.xlu0 %3069, %v3676_v55   ;;  %v3766_v44 = vld [vmem:[%s3455_s23 + $0x198] sm:$0xff] }
 0x10a   : > { %v3753_v7 = vpop.permute.xlu0 %846 }
 0x10b   : > { %5069 = vst [vmem:[#allocation27_spill] sm:$0xff] %v3753_v7  ;;  %v3755_v18 = vpop.permute.xlu1 %498 }
 0x10c   : > { %5070 = vst [vmem:[#allocation28_spill] sm:$0xff] %v3755_v18  ;;  %1030 = vperm.xlu1 %3047, %v3641_v46   ;;  %1774 = vperm.xlu0 %3069, %v3604_v38  }
 0x10e   : > { %v3759_v42 = vpop.permute.xlu0 %856 }
 0x10f   : > { %5071 = vst [vmem:[#allocation29_spill] sm:$0xff] %v3759_v42  ;;  %v3761_v32 = vpop.permute.xlu1 %506 }
 0x110   : > { %5072 = vst [vmem:[#allocation30_spill] sm:$0xff] %v3761_v32  ;;  %1038 = vperm.xlu1 %3047, %v3649_v48   ;;  %1342 = vperm.xlu0 %3069, %v3577_v31   ;;  %v3781_v48 = vld [vmem:[%s3455_s23 + $0x1b8] sm:$0xff] }
 0x112   : > { %v3768_v36 = vpop.permute.xlu0 %866 }
 0x113   : > { %5073 = vst [vmem:[#allocation31_spill] sm:$0xff] %v3768_v36  ;;  %v3770_v7 = vpop.permute.xlu1 %514 }
 0x114   : > { %5074 = vst [vmem:[#allocation32_spill] sm:$0xff] %v3770_v7  ;;  %1046 = vperm.xlu1 %3047, %v3657_v50   ;;  %1786 = vperm.xlu0 %3069, %v3766_v44  }
 0x116   : > { %v3774_v46 = vpop.permute.xlu0 %1232 }
 0x117   : > { %5075 = vst [vmem:[#allocation33_spill] sm:$0xff] %v3774_v46  ;;  %v3801_v46 = vld [vmem:[%s3455_s23 + $0x100] sm:$0xff] }
 0x118   : > { %1054 = vperm.xlu1 %3047, %v3662_v51   ;;  %v3777_v42 = vpop.permute.xlu1 %574  ;;  %1354 = vperm.xlu0 %3069, %v3582_v33  }
 0x119   : > { %5076 = vst [vmem:[#allocation34_spill] sm:$0xff] %v3777_v42  ;;  %v3796_v42 = vld [vmem:[%s3455_s23 + $0x1d8] sm:$0xff] }
 0x11a   : > { %v3783_v32 = vpop.permute.xlu0 %1247  ;;  %5081 = vst [vmem:[#allocation39_spill] sm:$0xff] %v3796_v42 }
 0x11b   : > { %5077 = vst [vmem:[#allocation35_spill] sm:$0xff] %v3783_v32 }
 0x11c   : > { %1062 = vperm.xlu1 %3047, %v3667_v52   ;;  %v3786_v36 = vpop.permute.xlu1 %582  ;;  %1802 = vperm.xlu0 %3069, %v3781_v48   ;;  %v5083_v52 = vmov 0  }
 0x11d   : > { %5078 = vst [vmem:[#allocation36_spill] sm:$0xff] %v3786_v36  ;;  %v3838_v36 = vld [vmem:[%s3455_s23 + $0x138] sm:$0xff] }
 0x11e   : > { %v3789_v50 = vpop.permute.xlu0 %1257 }
 0x11f   : > { %5079 = vst [vmem:[#allocation37_spill] sm:$0xff] %v3789_v50  ;;  %v3811_v50 = vld [vmem:[%s3455_s23 + $0x110] sm:$0xff] }
 0x120   : > { %1070 = vperm.xlu1 %3047, %v3676_v55   ;;  %v3792_v51 = vpop.permute.xlu1 %586  ;;  %1370 = vperm.xlu0 %3069, %v3592_v35  }
 0x121   : > { %5080 = vst [vmem:[#allocation38_spill] sm:$0xff] %v3792_v51 }
 0x122   : > { %v3798_v32 = vpop.permute.xlu0 %1267 }
 0x123   : > { %5082 = vst [vmem:[#allocation40_spill] sm:$0xff] %v3798_v32  ;;  %v1660_v32 = vld [vmem:[%s3455_s23 + $0x1f8] sm:$0xff] }
 0x124   : > { %3048 = vset.pattern.permute.xlu1 %v5083_v52  ;;  %v3804_v7 = vpop.permute.xlu1 %594  ;;  %1818 = vperm.xlu0 %3069, %v3796_v42  }
 0x125   : > { %5084 = vst [vmem:[#allocation41_spill] sm:$0xff] %v3804_v7  ;;  %1227 = vperm.xlu1 %3048, %v3801_v46   ;;  %v3821_v7 = vld [vmem:[%s3455_s23 + $0x118] sm:$0xff] }
 0x126   : > { %v3808_v55 = vpop.permute.xlu0 %1277 }
 0x127   : > { %5085 = vst [vmem:[#allocation42_spill] sm:$0xff] %v3808_v55  ;;  %v1223_v55 = vld [vmem:[%s3455_s23 + $0x170] sm:$0xff] }
 0x128   : > { %v3813_v35 = vpop.permute.xlu1 %602  ;;  %1386 = vperm.xlu0 %3069, %v3599_v37  }
 0x129   : > { %5086 = vst [vmem:[#allocation43_spill] sm:$0xff] %v3813_v35  ;;  %1237 = vperm.xlu1 %3048, %v3811_v50   ;;  %v3830_v35 = vld [vmem:[%s3455_s23 + $0x128] sm:$0xff] }
 0x12a   : > { %v3818_v51 = vpop.permute.xlu0 %1287 }
 0x12b   : > { %5087 = vst [vmem:[#allocation44_spill] sm:$0xff] %v3818_v51 }
 0x12c   : > { %v3823_v18 = vpop.permute.xlu1 %610  ;;  %1834 = vperm.xlu0 %3069, %v1660_v32   ;;  %v5093_v32 = vmov 2  }
 0x12d   : > { %5088 = vst [vmem:[#allocation45_spill] sm:$0xff] %v3823_v18  ;;  %1242 = vperm.xlu1 %3048, %v3821_v7  }
 0x12e   : > { %v3827_v42 = vpop.permute.xlu0 %1663 }
 0x12f   : > { %5089 = vst [vmem:[#allocation46_spill] sm:$0xff] %v3827_v42 }
 0x130   : > { %v3832_v37 = vpop.permute.xlu1 %618  ;;  %1394 = vperm.xlu0 %3069, %v1223_v55  }
 0x131   : > { %5090 = vst [vmem:[#allocation47_spill] sm:$0xff] %v3832_v37  ;;  %1252 = vperm.xlu1 %3048, %v3830_v35   ;;  %v3848_v37 = vld [vmem:[%s3455_s23 + $0x148] sm:$0xff] }
 0x132   : > { %v3835_v51 = vpop.permute.xlu0 %1673  ;;  %5095 = vst [vmem:[#allocation51_spill] sm:$0xff] %v3848_v37 }
 0x133   : > { %5091 = vst [vmem:[#allocation48_spill] sm:$0xff] %v3835_v51 }
 0x134   : > { %v3840_v18 = vpop.permute.xlu1 %626  ;;  %3073 = vset.pattern.permute.xlu0 %v5093_v32 }
 0x135   : > { %5092 = vst [vmem:[#allocation49_spill] sm:$0xff] %v3840_v18  ;;  %1262 = vperm.xlu1 %3048, %v3838_v36   ;;  %578 = vperm.xlu0 %3073, %v3483_v9   ;;  %v3857_v18 = vld [vmem:[%s3455_s23 + $0x158] sm:$0xff] }
 0x136   : > { %v3845_v42 = vpop.permute.xlu0 %1688  ;;  %5098 = vst [vmem:[#allocation54_spill] sm:$0xff] %v3857_v18 }
 0x137   : > { %5094 = vst [vmem:[#allocation50_spill] sm:$0xff] %v3845_v42  ;;  %v1222_v42 = vld [vmem:[%s3455_s23 + $0x168] sm:$0xff] }
 0x138   : > { %v3850_v55 = vpop.permute.xlu1 %634 }
 0x139   : > { %5096 = vst [vmem:[#allocation52_spill] sm:$0xff] %v3850_v55  ;;  %1272 = vperm.xlu1 %3048, %v3848_v37   ;;  %590 = vperm.xlu0 %3073, %v3491_v11   ;;  %v1646_v11 = vld [vmem:[%s3455_s23 + $0x188] sm:$0xff] }
 0x13a   : > { %v3854_v51 = vpop.permute.xlu0 %1693 }
 0x13b   : > { %5097 = vst [vmem:[#allocation53_spill] sm:$0xff] %v3854_v51 }
 0x13d   : > { %1282 = vperm.xlu1 %3048, %v3857_v18   ;;  %v3860_v14 = vpop.permute.xlu1 %796  ;;  %598 = vperm.xlu0 %3073, %v3499_v13  }
 0x13e   : > { %5099 = vst [vmem:[#allocation55_spill] sm:$0xff] %v3860_v14  ;;  %v3863_v9 = vpop.permute.xlu0 %1708  ;;  %v5103_v14 = vmov 1  }
 0x13f   : > { %5100 = vst [vmem:[#allocation56_spill] sm:$0xff] %v3863_v9 }
 0x141   : > { %1292 = vperm.xlu1 %3048, %v1222_v42   ;;  %v3866_v10 = vpop.permute.xlu1 %801  ;;  %606 = vperm.xlu0 %3073, %v3507_v15  }
 0x142   : > { %v3869_v37 = vpop.permute.xlu0 %1713 }
 0x143   : > { %5101 = vst [vmem:[#allocation57_spill] sm:$0xff] %v3869_v37 }
 0x145   : > { %1668 = vperm.xlu1 %3048, %v1646_v11   ;;  %v3872_v51 = vpop.permute.xlu1 %811  ;;  %614 = vperm.xlu0 %3073, %v3515_v17  }
 0x146   : > { %v3875_v55 = vpop.permute.xlu0 %1728 }
 0x147   : > { %5102 = vst [vmem:[#allocation58_spill] sm:$0xff] %v3875_v55 }
 0x149   : > { %3049 = vset.pattern.permute.xlu1 %v5103_v14  ;;  %v3878_v13 = vpop.permute.xlu1 %821  ;;  %622 = vperm.xlu0 %3073, %v3523_v19  }
 0x14a   : > { %1778 = vperm.xlu1 %3049, %v1646_v11   ;;  %v3881_v42 = vpop.permute.xlu0 %1733 }
 0x14b   : > { %5104 = vst [vmem:[#allocation59_spill] sm:$0xff] %v3881_v42 }
 0x14d   : > { %v3883_v15 = vpop.permute.xlu1 %831  ;;  %630 = vperm.xlu0 %3073, %v3531_v21  }
 0x14e   : > { %1338 = vperm.xlu1 %3049, %v3801_v46  }
 0x14f   : > { %v3887_v37 = vpop.permute.xlu0 %458 }
 0x151   : > { %v3889_v17 = vpop.permute.xlu1 %841  ;;  %1014 = vperm.xlu0 %3073, %v3536_v22  }
 0x152   : > { %3050 = vset.pattern.permute.xlu1 %v5093_v32 }
 0x153   : > { %1886 = vperm.xlu1 %3050, %v3604_v38   ;;  %v3894_v19 = vpop.permute.xlu0 %470 }
 0x155   : > { %v3896_v55 = vpop.permute.xlu1 %851  ;;  %1026 = vperm.xlu0 %3073, %v3542_v24  }
 0x157   : > { %1450 = vperm.xlu1 %3050, %v3801_v46   ;;  %v3900_v21 = vpop.permute.xlu0 %478 }
 0x159   : > { %v3902_v42 = vpop.permute.xlu1 %861  ;;  %1034 = vperm.xlu0 %3073, %v3547_v25  }
 0x15a   : > { %5105 = vst [vmem:[#allocation60_spill] sm:$0xff] %v3902_v42 }
 0x15b   : > { %1454 = vperm.xlu1 %3050, %v3577_v31   ;;  %v3906_v22 = vpop.permute.xlu0 %486 }
 0x15d   : > { %1042 = vperm.xlu0 %3073, %v3552_v26  }
 0x15e   : > { %v3909_v38 = vpop.permute.xlu1 %902 }
 0x15f   : > { %3051 = vset.pattern.permute.xlu1 %v5083_v52  ;;  %v3912_v9 = vpop.permute.xlu0 %494 }
 0x160   : > { %1678 = vperm.xlu1 %3051, %v3766_v44  }
 0x161   : > { %1050 = vperm.xlu0 %3073, %v3557_v27  }
 0x162   : > { %v3916_v24 = vpop.permute.xlu1 %910 }
 0x163   : > { %v3918_v46 = vpop.permute.xlu0 %502 }
 0x164   : > { %3052 = vset.pattern.permute.xlu1 %v5103_v14 }
 0x165   : > { %1782 = vperm.xlu1 %3052, %v3609_v39   ;;  %1058 = vperm.xlu0 %3073, %v3562_v28  }
 0x166   : > { %v3923_v25 = vpop.permute.xlu1 %914 }
 0x167   : > { %5106 = vst [vmem:[#allocation61_spill] sm:$0xff] %v3923_v25  ;;  %v3925_v26 = vpop.permute.xlu0 %510 }
 0x169   : > { %1346 = vperm.xlu1 %3052, %v3811_v50   ;;  %1066 = vperm.xlu0 %3073, %v3567_v29  }
 0x16a   : > { %v3929_v27 = vpop.permute.xlu1 %922 }
 0x16b   : > { %5107 = vst [vmem:[#allocation62_spill] sm:$0xff] %v3929_v27  ;;  %v3931_v31 = vpop.permute.xlu0 %518 }
 0x16d   : > { %1350 = vperm.xlu1 %3052, %v3821_v7   ;;  %1074 = vperm.xlu0 %3073, %v3572_v30  }
 0x16e   : > { %v3935_v42 = vpop.permute.xlu1 %930 }
 0x16f   : > { %5108 = vst [vmem:[#allocation63_spill] sm:$0xff] %v3935_v42  ;;  %v3937_v28 = vpop.permute.xlu0 %906  ;;  %v1649_v42 = vld [vmem:[%s3455_s23 + $0x1a0] sm:$0xff] }
 0x171   : > { %3053 = vset.pattern.permute.xlu1 %v5093_v32  ;;  %1890 = vperm.xlu0 %3073, %v1646_v11  }
 0x172   : > { %1898 = vperm.xlu1 %3053, %v3766_v44   ;;  %v3941_v25 = vpop.permute.xlu1 %938 }
 0x173   : > { %5109 = vst [vmem:[#allocation64_spill] sm:$0xff] %v3941_v25  ;;  %v3943_v29 = vpop.permute.xlu0 %918 }
 0x174   : > { %5110 = vst [vmem:[#allocation65_spill] sm:$0xff] %v3943_v29 }
 0x175   : > { %1894 = vperm.xlu0 %3073, %v3609_v39  }
 0x176   : > { %1458 = vperm.xlu1 %3053, %v3811_v50   ;;  %v3947_v27 = vpop.permute.xlu1 %946 }
 0x177   : > { %5111 = vst [vmem:[#allocation66_spill] sm:$0xff] %v3947_v27  ;;  %v3949_v30 = vpop.permute.xlu0 %926 }
 0x178   : > { %5112 = vst [vmem:[#allocation67_spill] sm:$0xff] %v3949_v30  ;;  %v421_v30 = vlaneseq }
 0x179   : > { %1462 = vperm.xlu0 %3073, %v3821_v7  }
 0x17a   : > { %3054 = vset.pattern.permute.xlu1 %v5083_v52  ;;  %v3954_v11 = vpop.permute.xlu1 %954 }
 0x17b   : > { %5113 = vst [vmem:[#allocation68_spill] sm:$0xff] %v3954_v11  ;;  %1683 = vperm.xlu1 %3054, %v1649_v42   ;;  %v3956_v44 = vpop.permute.xlu0 %934 }
 0x17c   : > { %5114 = vst [vmem:[#allocation69_spill] sm:$0xff] %v3956_v44 }
 0x17d   : > { %1906 = vperm.xlu0 %3073, %v3614_v40  }
 0x17e   : > { %v3959_v29 = vpop.permute.xlu1 %962 }
 0x17f   : > { %5115 = vst [vmem:[#allocation70_spill] sm:$0xff] %v3959_v29  ;;  %3055 = vset.pattern.permute.xlu1 %v5103_v14  ;;  %v3962_v39 = vpop.permute.xlu0 %942 }
 0x180   : > { %5116 = vst [vmem:[#allocation71_spill] sm:$0xff] %v3962_v39  ;;  %1790 = vperm.xlu1 %3055, %v1649_v42  }
 0x181   : > { %1910 = vperm.xlu0 %3073, %v3619_v41  }
 0x183   : > { %v3965_v50 = vpop.permute.xlu1 %1018  ;;  %v3967_v7 = vpop.permute.xlu0 %950 }
 0x184   : > { %5117 = vst [vmem:[#allocation72_spill] sm:$0xff] %v3965_v50  ;;  %5118 = vst [vmem:[#allocation73_spill] sm:$0xff] %v3967_v7  ;;  %1794 = vperm.xlu1 %3055, %v3614_v40   ;;  %v5151_v50 = vld [vmem:[#allocation38_spill] sm:$0xff] }
 0x185   : > { %1478 = vperm.xlu0 %3073, %v3838_v36  }
 0x187   : > { %v3971_v11 = vpop.permute.xlu1 %1022  ;;  %v3973_v44 = vpop.permute.xlu0 %958 }
 0x188   : > { %5119 = vst [vmem:[#allocation74_spill] sm:$0xff] %v3971_v11  ;;  %5120 = vst [vmem:[#allocation75_spill] sm:$0xff] %v3973_v44  ;;  %1358 = vperm.xlu1 %3055, %v3830_v35   ;;  %v3987_v44 = vshrl.u32 %v421_v30, 7 }
 0x189   : > { %1922 = vperm.xlu0 %3073, %v3627_v43  }
 0x18a   : > { %5125 = vst [vmem:[#allocation80_spill] sm:$0xff] %v3987_v44  ;;  %v5043_v27 = vsub.s32 0, %v3987_v44 }
 0x18b   : > { %v3977_v29 = vpop.permute.xlu1 %1030  ;;  %v3979_v39 = vpop.permute.xlu0 %1774 }
 0x18c   : > { %5121 = vst [vmem:[#allocation76_spill] sm:$0xff] %v3977_v29  ;;  %5122 = vst [vmem:[#allocation77_spill] sm:$0xff] %v3979_v39  ;;  %3056 = vset.pattern.permute.xlu1 %v5093_v32 }
 0x18d   : > { %1902 = vperm.xlu1 %3056, %v1649_v42   ;;  %1926 = vperm.xlu0 %3073, %v3636_v45   ;;  %v324_v42 = vld [vmem:[%s3460_s12] sm:$0x7] }
 0x18f   : > { %v3983_v40 = vpop.permute.xlu1 %1038  ;;  %v3985_v7 = vpop.permute.xlu0 %1342 }
 0x190   : > { %5123 = vst [vmem:[#allocation78_spill] sm:$0xff] %v3983_v40  ;;  %5124 = vst [vmem:[#allocation79_spill] sm:$0xff] %v3985_v7 }
 0x191   : > { %1466 = vperm.xlu1 %3056, %v3582_v33   ;;  %1494 = vperm.xlu0 %3073, %v3857_v18   ;;  %v4005_v33 = vrot.slane %v324_v42, %v5043_v27  ;;  %v523_v18 = vsub.s32 1, %v3987_v44 }
 0x193   : > { %v3991_v29 = vpop.permute.xlu1 %1046  ;;  %v3993_v39 = vpop.permute.xlu0 %1786  ;;  %v425_v27 = vsub.f32 %v3673_v54, %v4005_v33 }
 0x194   : > { %5126 = vst [vmem:[#allocation81_spill] sm:$0xff] %v3991_v29  ;;  %5127 = vst [vmem:[#allocation82_spill] sm:$0xff] %v3993_v39  ;;  %v1224_v39 = vld [vmem:[%s3455_s23 + $0x178] sm:$0xff]  ;;  %v4025_v29 = vrot.slane %v324_v42, %v523_v18 }
 0x195   : > { %1470 = vperm.xlu1 %3056, %v3830_v35   ;;  %1938 = vperm.xlu0 %3073, %v3644_v47   ;;  %v639_v35 = vsub.s32 2, %v3987_v44  ;;  %v430_v44 = vsub.f32 %v3685_v58, %v4005_v33 }
 0x197   : > { %v3999_v45 = vpop.permute.xlu1 %1054  ;;  %v4001_v30 = vpop.permute.xlu0 %1354  ;;  %v4034_v54 = vrot.slane %v324_v42, %v639_v35  ;;  %v433_v42 = vsub.f32 %v3700_v63, %v4005_v33  ;;  %v4053_v35 = vmul.f32 %v430_v44, %v430_v44  ;;  %v437_v63 = vsub.f32 %v3712_v3, %v4005_v33 }
 0x198   : > { %5128 = vst [vmem:[#allocation83_spill] sm:$0xff] %v3999_v45  ;;  %5129 = vst [vmem:[#allocation84_spill] sm:$0xff] %v4001_v30  ;;  %v427_v30 = vsub.f32 %v3670_v53, %v4005_v33  ;;  %v428_v45 = vsub.f32 %v3679_v56, %v4005_v33  ;;  %v432_v53 = vsub.f32 %v3692_v60, %v4005_v33 }
 0x199   : > { %3057 = vset.pattern.permute.xlu1 %v5083_v52  ;;  %1942 = vperm.xlu0 %3073, %v3652_v49   ;;  %v426_v49 = vsub.f32 %v3682_v57, %v4005_v33  ;;  %v434_v60 = vsub.f32 %v3698_v62, %v4005_v33  ;;  %v438_v62 = vsub.f32 %v3710_v2, %v4005_v33 }
 0x19a   : > { %1698 = vperm.xlu1 %3057, %v3781_v48   ;;  %v443_v18 = vmul.f32 %v427_v30, %v427_v30  ;;  %v4043_v58 = vmul.f32 %v428_v45, %v428_v45  ;;  %v435_v45 = vsub.f32 %v3706_v1, %v4005_v33  ;;  %v869_v1 = vsub.f32 %v3722_v6, %v4005_v33 }
 0x19b   : > { %v4013_v47 = vpop.permute.xlu1 %1062  ;;  %v4015_v7 = vpop.permute.xlu0 %1802  ;;  %v527_v2 = vsub.f32 %v3730_v12, %v4025_v29  ;;  %v4078_v3 = vmul.f32 %v434_v60, %v434_v60  ;;  %v533_v6 = vsub.f32 %v3749_v23, %v4025_v29  ;;  %v453_v12 = vmul.f32 %v437_v63, %v437_v63  ;;  %v5136_v60 = vld [vmem:[#allocation23_spill] sm:$0xff] }
 0x19c   : > { %5130 = vst [vmem:[#allocation85_spill] sm:$0xff] %v4013_v47  ;;  %5131 = vst [vmem:[#allocation86_spill] sm:$0xff] %v4015_v7  ;;  %v429_v7 = vsub.f32 %v3688_v59, %v4005_v33  ;;  %v431_v59 = vsub.f32 %v3694_v61, %v4005_v33  ;;  %v442_v47 = vmul.f32 %v426_v49, %v426_v49 }
 0x19d   : > { %1510 = vperm.xlu0 %3073, %v1224_v39   ;;  %v4041_v39 = vmul.f32 %v425_v27, %v425_v27  ;;  %v436_v27 = vsub.f32 %v3704_v0, %v4005_v33  ;;  %v4059_v61 = vmul.f32 %v432_v53, %v432_v53  ;;  %v439_v0 = vsub.f32 %v3718_v5, %v4005_v33 }
 0x19e   : > { %3058 = vset.pattern.permute.xlu1 %v5103_v14  ;;  %v445_v30 = vmul.f32 %v429_v7, %v429_v7  ;;  %v447_v7 = vmul.f32 %v431_v59, %v431_v59  ;;  %v449_v53 = vmul.f32 %v433_v42, %v433_v42  ;;  %v451_v59 = vmul.f32 %v435_v45, %v435_v45 }
 0x19f   : > { %1798 = vperm.xlu1 %3058, %v3619_v41   ;;  %v4037_v56 = vpop.permute.xlu1 %1070  ;;  %v4039_v57 = vpop.permute.xlu0 %1370  ;;  %v526_v41 = vsub.f32 %v3724_v8, %v4025_v29  ;;  %v440_v8 = vsub.f32 %v3716_v4, %v4005_v33  ;;  %v531_v5 = vsub.f32 %v3742_v20, %v4025_v29  ;;  %v872_v42 = vsub.f32 %v5136_v60, %v4005_v33  ;;  %v5141_v60 = vld [vmem:[#allocation36_spill] sm:$0xff] }
 0x1a0   : > { %5132 = vst [vmem:[#allocation87_spill] sm:$0xff] %v4037_v56  ;;  %5133 = vst [vmem:[#allocation88_spill] sm:$0xff] %v4039_v57  ;;  %v529_v57 = vsub.f32 %v3736_v16, %v4025_v29  ;;  %v4088_v56 = vmul.f32 %v438_v62, %v438_v62  ;;  %v543_v45 = vmul.f32 %v527_v2, %v527_v2  ;;  %v5143_v2 = vld [vmem:[#allocation26_spill] sm:$0xff] }
 0x1a1   : > { %v542_v4 = vmul.f32 %v526_v41, %v526_v41  ;;  %v455_v41 = vmul.f32 %v439_v0, %v439_v0  ;;  %v528_v20 = vsub.f32 %v3894_v19, %v4025_v29  ;;  %v547_v25 = vmul.f32 %v531_v5, %v531_v5  ;;  %v5142_v0 = vld [vmem:[#allocation25_spill] sm:$0xff] }
 0x1a2   : > { %v545_v63 = vmul.f32 %v529_v57, %v529_v57  ;;  %v878_v11 = vsub.f32 %v5143_v2, %v4005_v33  ;;  %v4113_v19 = vmul.f32 %v872_v42, %v872_v42  ;;  %v5146_v57 = vld [vmem:[#allocation27_spill] sm:$0xff]  ;;  %v5149_v42 = vld [vmem:[#allocation32_spill] sm:$0xff] }
 0x1a3   : > { %1362 = vperm.xlu1 %3058, %v3587_v34   ;;  %v4068_v44 = vpop.permute.xlu0 %1818  ;;  %v4103_v62 = vadd.f32 %v542_v4, %v442_v47  ;;  %v5145_v47 = vld [vmem:[#allocation28_spill] sm:$0xff]  ;;  %v539_v2 = vsub.f32 %v5149_v42, %v4025_v29 }
 0x1a4   : > { %5134 = vst [vmem:[#allocation89_spill] sm:$0xff] %v4068_v44  ;;  %v4076_v49 = vpop.permute.xlu1 %1227  ;;  %v4082_v44 = vmul.f32 %v436_v27, %v436_v27  ;;  %v4097_v27 = vmul.f32 %v869_v1, %v869_v1  ;;  %v876_v1 = vsub.f32 %v5142_v0, %v4005_v33  ;;  %v535_v4 = vsub.f32 %v5145_v47, %v4025_v29 }
 0x1a5   : > { %5135 = vst [vmem:[#allocation90_spill] sm:$0xff] %v4076_v49  ;;  %v4090_v49 = vmul.f32 %v440_v8, %v440_v8  ;;  %v5140_v8 = vld [vmem:[#allocation24_spill] sm:$0xff]  ;;  %v4143_v42 = vmul.f32 %v878_v11, %v878_v11 }
 0x1a6   : > { %5138 = vst [vmem:[#allocation91_spill] sm:$0xff] %v4097_v27  ;;  %v874_v40 = vsub.f32 %v5140_v8, %v4005_v33  ;;  %5144 = vst [vmem:[#allocation24_spill] sm:$0xff] %v4113_v19  ;;  %v525_v8 = vsub.f32 %v3887_v37, %v4025_v29  ;;  %v544_v19 = vmul.f32 %v528_v20, %v528_v20 }
 0x1a7   : > { %1366 = vperm.xlu1 %3058, %v3838_v36   ;;  %v4095_v16 = vpop.permute.xlu0 %1386  ;;  %v643_v36 = vsub.f32 %v5141_v60, %v4034_v54  ;;  %v559_v60 = vadd.f32 %v543_v45, %v443_v18  ;;  %v4137_v18 = vadd.f32 %v547_v25, %v447_v7  ;;  %v4139_v45 = vmul.f32 %v876_v1, %v876_v1  ;;  %v5155_v25 = vld [vmem:[#allocation31_spill] sm:$0xff]  ;;  %v5158_v1 = vld [vmem:[#allocation34_spill] sm:$0xff] }
 0x1a8   : > { %5137 = vst [vmem:[#allocation23_spill] sm:$0xff] %v4095_v16  ;;  %v4101_v23 = vpop.permute.xlu1 %1237  ;;  %v549_v16 = vmul.f32 %v533_v6, %v533_v6  ;;  %v5148_v6 = vld [vmem:[#allocation30_spill] sm:$0xff]  ;;  %v4133_v27 = vmul.f32 %v874_v40, %v874_v40  ;;  %v551_v20 = vmul.f32 %v535_v4, %v535_v4  ;;  %v541_v40 = vmul.f32 %v525_v8, %v525_v8 }
 0x1a9   : > { %5139 = vst [vmem:[#allocation92_spill] sm:$0xff] %v4101_v23  ;;  %v880_v23 = vsub.f32 %v5146_v57, %v4005_v33  ;;  %v537_v0 = vsub.f32 %v5148_v6, %v4025_v29  ;;  %v4131_v57 = vadd.f32 %v545_v63, %v445_v30  ;;  %v659_v37 = vmul.f32 %v643_v36, %v643_v36  ;;  %v5153_v30 = vld [vmem:[#allocation29_spill] sm:$0xff] }
 0x1aa   : > { %v4141_v6 = vadd.f32 %v549_v16, %v449_v53  ;;  %v882_v63 = vsub.f32 %v5153_v30, %v4005_v33  ;;  %v884_v7 = vsub.f32 %v5155_v25, %v4005_v33  ;;  %v560_v53 = vadd.f32 %v544_v19, %v4043_v58  ;;  %v5157_v16 = vld [vmem:[#allocation33_spill] sm:$0xff] }
 0x1ab   : > { %3059 = vset.pattern.permute.xlu1 %v5093_v32  ;;  %v4122_v5 = vpop.permute.xlu0 %1834  ;;  %v641_v4 = vsub.f32 %v5158_v1, %v4034_v54  ;;  %v675_v8 = vadd.f32 %v659_v37, %v559_v60  ;;  %v5161_v58 = vld [vmem:[#allocation45_spill] sm:$0xff]  ;;  %v532_v60 = vsub.f32 %v3906_v22, %v4025_v29 }
 0x1ac   : > { %5147 = vst [vmem:[#allocation36_spill] sm:$0xff] %v4122_v5  ;;  %1914 = vperm.xlu1 %3059, %v3781_v48   ;;  %v4129_v47 = vpop.permute.xlu1 %1242  ;;  %v644_v5 = vsub.f32 %v5151_v50, %v4034_v54  ;;  %v4145_v48 = vmul.f32 %v880_v23, %v880_v23  ;;  %v555_v50 = vmul.f32 %v539_v2, %v539_v2 }
 0x1ad   : > { %5150 = vst [vmem:[#allocation25_spill] sm:$0xff] %v4129_v47  ;;  %v553_v47 = vmul.f32 %v537_v0, %v537_v0  ;;  %v1306_v23 = vsub.f32 %v5157_v16, %v4005_v33  ;;  %v5159_v0 = vld [vmem:[#allocation41_spill] sm:$0xff]  ;;  %v650_v19 = vsub.f32 %v5161_v58, %v4034_v54  ;;  %v4172_v16 = vadd.f32 %v551_v20, %v451_v59 }
 0x1ae   : > { %5152 = vst [vmem:[#allocation26_spill] sm:$0xff] %v4145_v48  ;;  %v660_v30 = vmul.f32 %v644_v5, %v644_v5  ;;  %v646_v2 = vsub.f32 %v5159_v0, %v4034_v54  ;;  %v4174_v48 = vmul.f32 %v882_v63, %v882_v63  ;;  %v557_v5 = vadd.f32 %v541_v40, %v4041_v39  ;;  %v5164_v40 = vld [vmem:[#allocation46_spill] sm:$0xff] }
 0x1af   : > { %v4149_v36 = vpop.permute.xlu0 %1394  ;;  %v4179_v37 = vadd.f32 %v553_v47, %v453_v12  ;;  %v4183_v1 = vmul.f32 %v884_v7, %v884_v7  ;;  %v4188_v20 = vmul.f32 %v1306_v23, %v1306_v23  ;;  %v657_v63 = vmul.f32 %v641_v4, %v641_v4  ;;  %v5166_v4 = vld [vmem:[#allocation48_spill] sm:$0xff] }
 0x1b0   : > { %5154 = vst [vmem:[#allocation28_spill] sm:$0xff] %v4149_v36  ;;  %1474 = vperm.xlu1 %3059, %v3587_v34   ;;  %v4155_v11 = vpop.permute.xlu1 %1252  ;;  %v5160_v36 = vld [vmem:[#allocation43_spill] sm:$0xff]  ;;  %v530_v34 = vsub.f32 %v3900_v21, %v4025_v29  ;;  %v676_v59 = vadd.f32 %v660_v30, %v560_v53  ;;  %vm691_vm0 = vcmp.le.f32.partialorder %v675_v8, 0.04  ;;  %v662_v22 = vmul.f32 %v646_v2, %v646_v2 }
 0x1b1   : > { %5156 = vst [vmem:[#allocation27_spill] sm:$0xff] %v4155_v11  ;;  %v648_v25 = vsub.f32 %v5160_v36, %v4034_v54  ;;  %v4170_v11 = vld [vmem:[%s3455_s23 + $0x1c0] sm:$0xff]  ;;  %v4181_v36 = vadd.f32 %v555_v50, %v455_v41  ;;  %5163 = vst [vmem:[#allocation32_spill] sm:$0xff] %v4188_v20  ;;  %v4192_v41 = vmul.f32 %v650_v19, %v650_v19  ;;  %v5165_v53 = vld [vmem:[#allocation47_spill] sm:$0xff] }
 0x1b2   : > { %v546_v47 = vmul.f32 %v530_v34, %v530_v34  ;;  %v1741_v50 = vsub.f32 %v5164_v40, %v4005_v33  ;;  %v548_v7 = vmul.f32 %v532_v60, %v532_v60  ;;  %v652_v23 = vsub.f32 %v5165_v53, %v4034_v54  ;;  %v5168_v19 = vld [vmem:[#allocation52_spill] sm:$0xff] }
 0x1b3   : > { %v664_v12 = vmul.f32 %v648_v25, %v648_v25  ;;  %v1743_v30 = vsub.f32 %v5166_v4, %v4005_v33  ;;  %vm692_vm1 = vcmp.le.f32.partialorder %v676_v59, 0.04  ;;  %v656_v34 = vsub.f32 %v5168_v19, %v4034_v54 }
 0x1b4   : > { %3060 = vset.pattern.permute.xlu1 %v5083_v52  ;;  %v4186_v21 = vpop.permute.xlu1 %1262  ;;  %v579_v0 = vpop.permute.xlu0 %578  ;;  %v534_v60 = vsub.f32 %v3912_v9, %v4025_v29  ;;  %v871_v53 = vsub.f32 %v3866_v10, %v4005_v33  ;;  %v562_v4 = vadd.f32 %v546_v47, %v4053_v35  ;;  %v564_v9 = vadd.f32 %v548_v7, %v4059_v61  ;;  %vm4222_vm4 = vmpackc.low %vm692_vm1, %vm691_vm0 }
 0x1b5   : > { %5162 = vst [vmem:[#allocation30_spill] sm:$0xff] %v4186_v21  ;;  %v642_v39 = vsub.f32 %v579_v0, %v4034_v54  ;;  %1703 = vperm.xlu1 %3060, %v4170_v11   ;;  %v673_v21 = vadd.f32 %v657_v63, %v557_v5  ;;  %v5167_v0 = vld [vmem:[#allocation49_spill] sm:$0xff]  ;;  %v668_v10 = vmul.f32 %v652_v23, %v652_v23 }
 0x1b6   : > { %v654_v20 = vsub.f32 %v5167_v0, %v4034_v54  ;;  %v536_v0 = vsub.f32 %v3918_v46, %v4025_v29  ;;  %v4228_v35 = vmul.f32 %v1743_v30, %v1743_v30  ;;  %v873_v46 = vsub.f32 %v3872_v51, %v4005_v33 }
 0x1b7   : > { %v658_v58 = vmul.f32 %v642_v39, %v642_v39  ;;  %v5169_v39 = vld [vmem:[#allocation55_spill] sm:$0xff]  ;;  %vm689_vm2 = vcmp.le.f32.partialorder %v673_v21, 0.04  ;;  %v550_v59 = vmul.f32 %v534_v60, %v534_v60  ;;  %v4246_v51 = vmul.f32 %v656_v34, %v656_v34 }
 0x1b8   : > { %v4202_v2 = vpop.permute.xlu1 %1272  ;;  %v591_v25 = vpop.permute.xlu0 %590  ;;  %v870_v40 = vsub.f32 %v5169_v39, %v4005_v33  ;;  %v4238_v8 = vmul.f32 %v654_v20, %v654_v20  ;;  %v552_v23 = vmul.f32 %v536_v0, %v536_v0  ;;  %v678_v19 = vadd.f32 %v662_v22, %v562_v4  ;;  %v5212_v21 = vld [vmem:[#allocation75_spill] sm:$0xff] }
 0x1b9   : > { %v674_v5 = vadd.f32 %v658_v58, %v4103_v62  ;;  %v645_v63 = vsub.f32 %v591_v25, %v4034_v54  ;;  %3061 = vset.pattern.permute.xlu1 %v5103_v14  ;;  %v4226_v25 = vmul.f32 %v1741_v50, %v1741_v50  ;;  %v4252_v60 = vmul.f32 %v871_v53, %v871_v53 }
 0x1ba   : > { %1806 = vperm.xlu1 %3061, %v4170_v11   ;;  %v4250_v20 = vmul.f32 %v870_v40, %v870_v40  ;;  %v875_v39 = vsub.f32 %v3878_v13, %v4005_v33  ;;  %v877_v34 = vsub.f32 %v3883_v15, %v4005_v33  ;;  %v879_v22 = vsub.f32 %v3889_v17, %v4005_v33 }
 0x1bb   : > { %v661_v62 = vmul.f32 %v645_v63, %v645_v63  ;;  %vm690_vm3 = vcmp.le.f32.partialorder %v674_v5, 0.04  ;;  %v680_v5 = vadd.f32 %v664_v12, %v564_v9  ;;  %v4255_v63 = vmul.f32 %v873_v46, %v873_v46  ;;  %v5174_v9 = vld [vmem:[#allocation51_spill] sm:$0xff] }
 0x1bc   : > { %v4232_v47 = vpop.permute.xlu1 %1282  ;;  %v599_v61 = vpop.permute.xlu0 %598  ;;  %vm4234_vm5 = vmpackc.low %vm690_vm3, %vm689_vm2  ;;  %v566_v40 = vadd.f32 %v550_v59, %v4078_v3  ;;  %v568_v4 = vadd.f32 %v552_v23, %v4082_v44  ;;  %v538_v13 = vsub.f32 %v3925_v26, %v4025_v29  ;;  %v540_v15 = vsub.f32 %v3931_v31, %v4025_v29  ;;  %v5179_v59 = vld [vmem:[#allocation61_spill] sm:$0xff] }
 0x1bd   : > { %v677_v50 = vadd.f32 %v661_v62, %v4131_v57  ;;  %v647_v7 = vsub.f32 %v599_v61, %v4034_v54  ;;  %vm707_vm6 = vmpackc.even %vm4222_vm4, %vm4234_vm5  ;;  %vm694_vm8 = vcmp.le.f32.partialorder %v678_v19, 0.04  ;;  %v881_v17 = vsub.f32 %v3896_v55, %v4005_v33 }
 0x1be   : > { %1810 = vperm.xlu1 %3061, %v3627_v43   ;;  %v717_v30 = vsel %vm707_vm6, 16843009, %v5083_v52  ;;  %vm696_vm11 = vcmp.le.f32.partialorder %v680_v5, 0.04  ;;  %v4281_v44 = vmul.f32 %v875_v39, %v875_v39  ;;  %v4283_v26 = vmul.f32 %v877_v34, %v877_v34 }
 0x1bf   : > { %v663_v57 = vmul.f32 %v647_v7, %v647_v7  ;;  %721 = vst [vmem:[%s3466_s13] sm:$0xff] %v717_v30  ;;  %vm693_vm7 = vcmp.le.f32.partialorder %v677_v50, 0.04  ;;  %v965_v31 = vsub.f32 %v3909_v38, %v4025_v29  ;;  %v967_v62 = vsub.f32 %v3916_v24, %v4025_v29 }
 0x1c0   : > { %v4261_v43 = vpop.permute.xlu1 %1292  ;;  %v607_v0 = vpop.permute.xlu0 %606  ;;  %vm4277_vm10 = vmpackc.low %vm694_vm8, %vm693_vm7  ;;  %v968_v50 = vsub.f32 %v5179_v59, %v4025_v29  ;;  %v682_v38 = vadd.f32 %v4192_v41, %v566_v40  ;;  %v554_v24 = vmul.f32 %v538_v13, %v538_v13  ;;  %v556_v30 = vmul.f32 %v540_v15, %v540_v15  ;;  %v5184_v59 = vld [vmem:[#allocation22_spill] sm:$0xff] }
 0x1c1   : > { %v679_v53 = vadd.f32 %v663_v57, %v4137_v18  ;;  %v649_v12 = vsub.f32 %v607_v0, %v4034_v54  ;;  %v684_v57 = vadd.f32 %v668_v10, %v568_v4  ;;  %v4306_v5 = vmul.f32 %v879_v22, %v879_v22 }
 0x1c2   : > { %1374 = vperm.xlu1 %3061, %v5174_v9   ;;  %v4308_v39 = vmul.f32 %v881_v17, %v881_v17  ;;  %v983_v41 = vmul.f32 %v967_v62, %v967_v62  ;;  %v966_v40 = vsub.f32 %v3937_v28, %v4025_v29  ;;  %v984_v13 = vmul.f32 %v968_v50, %v968_v50  ;;  %v5182_v28 = vld [vmem:[#allocation63_spill] sm:$0xff]  ;;  %v5183_v62 = vld [vmem:[#allocation72_spill] sm:$0xff] }
 0x1c3   : > { %vm695_vm9 = vcmp.le.f32.partialorder %v679_v53, 0.04  ;;  %v665_v3 = vmul.f32 %v649_v12, %v649_v12  ;;  %v981_v53 = vmul.f32 %v965_v31, %v965_v31  ;;  %vm698_vm15 = vcmp.le.f32.partialorder %v682_v38, 0.04  ;;  %v5187_v38 = vld [vmem:[#allocation91_spill] sm:$0xff] }
 0x1c4   : > { %v4289_v46 = vpop.permute.xlu1 %1668  ;;  %v615_v55 = vpop.permute.xlu0 %614  ;;  %vm4291_vm12 = vmpackc.low %vm696_vm11, %vm695_vm9  ;;  %v570_v15 = vadd.f32 %v554_v24, %v4088_v56  ;;  %vm700_vm0 = vcmp.le.f32.partialorder %v684_v57, 0.04  ;;  %v972_v31 = vsub.f32 %v5182_v28, %v4025_v29  ;;  %v5190_v57 = vld [vmem:[#allocation24_spill] sm:$0xff] }
 0x1c5   : > { %v681_v7 = vadd.f32 %v665_v3, %v4141_v6  ;;  %v651_v23 = vsub.f32 %v615_v55, %v4034_v54  ;;  %vm710_vm13 = vmpackc.even %vm4291_vm12, %vm4277_vm10  ;;  %v5180_v6 = vld [vmem:[#allocation60_spill] sm:$0xff]  ;;  %v572_v3 = vadd.f32 %v556_v30, %v4090_v49  ;;  %v1078_v55 = vsub.f32 %v5183_v62, %v4034_v54  ;;  %v5193_v62 = vld [vmem:[#allocation65_spill] sm:$0xff] }
 0x1c6   : > { %3062 = vset.pattern.permute.xlu1 %v5093_v32  ;;  %v718_v19 = vsel %vm710_vm13, 16843009, %v5083_v52  ;;  %v883_v34 = vsub.f32 %v5180_v6, %v4005_v33  ;;  %v997_v24 = vadd.f32 %v981_v53, %v5187_v38  ;;  %v4343_v6 = vadd.f32 %v984_v13, %v5190_v57  ;;  %v5192_v28 = vld [vmem:[#allocation64_spill] sm:$0xff] }
 0x1c7   : > { %v667_v0 = vmul.f32 %v651_v23, %v651_v23  ;;  %1918 = vperm.xlu1 %3062, %v4170_v11   ;;  %722 = vst [vmem:[%s3466_s13 + $0x8] sm:$0xff] %v718_v19  ;;  %vm697_vm14 = vcmp.le.f32.partialorder %v681_v7, 0.04  ;;  %v5181_v11 = vld [vmem:[#allocation62_spill] sm:$0xff]  ;;  %v982_v23 = vmul.f32 %v966_v40, %v966_v40  ;;  %v999_v19 = vadd.f32 %v983_v41, %v4252_v60 }
 0x1c8   : > { %v623_v12 = vpop.permute.xlu0 %622  ;;  %v970_v17 = vsub.f32 %v5181_v11, %v4025_v29  ;;  %vm4330_vm2 = vmpackc.low %vm698_vm15, %vm697_vm14  ;;  %v4334_v56 = vmul.f32 %v883_v34, %v883_v34  ;;  %v688_v60 = vadd.f32 %v4246_v51, %v572_v3  ;;  %v988_v41 = vmul.f32 %v972_v31, %v972_v31  ;;  %v5194_v51 = vld [vmem:[#allocation66_spill] sm:$0xff]  ;;  %v5195_v3 = vld [vmem:[#allocation67_spill] sm:$0xff] }
 0x1c9   : > { %v683_v10 = vadd.f32 %v667_v0, %v4172_v16  ;;  %v653_v22 = vsub.f32 %v623_v12, %v4034_v54  ;;  %v4318_v4 = vpop.permute.xlu1 %1778  ;;  %v686_v12 = vadd.f32 %v4238_v8, %v570_v15  ;;  %v1094_v13 = vmul.f32 %v1078_v55, %v1078_v55 }
 0x1ca   : > { %v986_v53 = vmul.f32 %v970_v17, %v970_v17  ;;  %v998_v11 = vadd.f32 %v982_v23, %v4250_v20  ;;  %v974_v17 = vsub.f32 %v5192_v28, %v4025_v29  ;;  %v976_v15 = vsub.f32 %v5194_v51, %v4025_v29 }
 0x1cb   : > { %vm699_vm1 = vcmp.le.f32.partialorder %v683_v10, 0.04  ;;  %v669_v16 = vmul.f32 %v653_v22, %v653_v22  ;;  %1482 = vperm.xlu1 %3062, %v5184_v59   ;;  %v971_v31 = vsub.f32 %v5195_v3, %v4025_v29  ;;  %v5196_v59 = vld [vmem:[#allocation76_spill] sm:$0xff]  ;;  %vm702_vm8 = vcmp.le.f32.partialorder %v686_v12, 0.04 }
 0x1cc   : > { %v631_v49 = vpop.permute.xlu0 %630  ;;  %vm4337_vm3 = vmpackc.low %vm700_vm0, %vm699_vm1  ;;  %v4372_v20 = vadd.f32 %v986_v53, %v4133_v27  ;;  %v1081_v23 = vsub.f32 %v5196_v59, %v4034_v54  ;;  %vm704_vm9 = vcmp.le.f32.partialorder %v688_v60, 0.04  ;;  %v4385_v27 = vadd.f32 %v988_v41, %v4139_v45  ;;  %v5200_v60 = vld [vmem:[#allocation39_spill] sm:$0xff]  ;;  %v5203_v45 = vld [vmem:[#allocation68_spill] sm:$0xff] }
 0x1cd   : > { %v685_v7 = vadd.f32 %v669_v16, %v4179_v37  ;;  %v655_v0 = vsub.f32 %v631_v49, %v4034_v54  ;;  %v4347_v34 = vpop.permute.xlu1 %1338  ;;  %vm713_vm6 = vmpackc.even %vm4337_vm3, %vm4330_vm2  ;;  %v5191_v37 = vld [vmem:[#allocation74_spill] sm:$0xff]  ;;  %v969_v16 = vsub.f32 %v5193_v62, %v4025_v29  ;;  %v990_v53 = vmul.f32 %v974_v17, %v974_v17 }
 0x1ce   : > { %v719_v40 = vsel %vm713_vm6, 16843009, %v5083_v52  ;;  %v1079_v10 = vsub.f32 %v5191_v37, %v4034_v54  ;;  %v5199_v37 = vld [vmem:[#allocation69_spill] sm:$0xff]  ;;  %v978_v41 = vsub.f32 %v5203_v45, %v4025_v29  ;;  %v1097_v17 = vmul.f32 %v1081_v23, %v1081_v23  ;;  %v5204_v62 = vld [vmem:[#allocation78_spill] sm:$0xff] }
 0x1cf   : > { %v671_v22 = vmul.f32 %v655_v0, %v655_v0  ;;  %1486 = vperm.xlu1 %3062, %v5174_v9   ;;  %723 = vst [vmem:[%s3466_s13 + $0x10] sm:$0xff] %v719_v40  ;;  %vm701_vm7 = vcmp.le.f32.partialorder %v685_v7, 0.04  ;;  %v1110_v0 = vadd.f32 %v1094_v13, %v998_v11  ;;  %v985_v40 = vmul.f32 %v969_v16, %v969_v16 }
 0x1d0   : > { %v1015_v8 = vpop.permute.xlu0 %1014  ;;  %v1095_v38 = vmul.f32 %v1079_v10, %v1079_v10  ;;  %vm4380_vm13 = vmpackc.low %vm702_vm8, %vm701_vm7  ;;  %v973_v12 = vsub.f32 %v5199_v37, %v4025_v29  ;;  %v992_v7 = vmul.f32 %v976_v15, %v976_v15  ;;  %v987_v13 = vmul.f32 %v971_v31, %v971_v31 }
 0x1d1   : > { %v687_v55 = vadd.f32 %v671_v22, %v4181_v36  ;;  %v1077_v9 = vsub.f32 %v1015_v8, %v4034_v54  ;;  %v1083_v16 = vsub.f32 %v5204_v62, %v4034_v54  ;;  %vm1126_vm1 = vcmp.le.f32.partialorder %v1110_v0, 0.04 }
 0x1d2   : > { %v4376_v49 = vpop.permute.xlu1 %1886  ;;  %v1111_v3 = vadd.f32 %v1095_v38, %v999_v19  ;;  %v1001_v31 = vadd.f32 %v985_v40, %v4255_v63  ;;  %v5208_v19 = vld [vmem:[#allocation26_spill] sm:$0xff]  ;;  %v3266_v63 = vmov 1.0|1.0   ;;  %v1003_v40 = vadd.f32 %v987_v13, %v4281_v44 }
 0x1d3   : > { %vm703_vm11 = vcmp.le.f32.partialorder %v687_v55, 0.04  ;;  %v1093_v57 = vmul.f32 %v1077_v9, %v1077_v9  ;;  %3063 = vset.pattern.permute.xlu1 %v5083_v52  ;;  %v989_v55 = vmul.f32 %v973_v12, %v973_v12  ;;  %v5205_v9 = vld [vmem:[#allocation71_spill] sm:$0xff]  ;;  %v4419_v38 = vadd.f32 %v992_v7, %v5208_v19  ;;  %v5210_v44 = vld [vmem:[#allocation70_spill] sm:$0xff] }
 0x1d4   : > { %1718 = vperm.xlu1 %3063, %v5200_v60   ;;  %v1027_v10 = vpop.permute.xlu0 %1026  ;;  %vm4390_vm14 = vmpackc.low %vm704_vm9, %vm703_vm11  ;;  %v975_v59 = vsub.f32 %v5205_v9, %v4025_v29  ;;  %v4428_v37 = vmul.f32 %v978_v41, %v978_v41  ;;  %v1113_v12 = vadd.f32 %v1097_v17, %v1001_v31  ;;  %v1099_v60 = vmul.f32 %v1083_v16, %v1083_v16  ;;  %v5211_v41 = vld [vmem:[#allocation73_spill] sm:$0xff]  ;;  %v5213_v31 = vld [vmem:[#allocation83_spill] sm:$0xff] }
 0x1d5   : > { %v1080_v11 = vsub.f32 %v1027_v10, %v4034_v54  ;;  %v1109_v28 = vadd.f32 %v1093_v57, %v997_v24  ;;  %vm716_vm15 = vmpackc.even %vm4390_vm14, %vm4380_vm13  ;;  %v4408_v24 = vadd.f32 %v990_v53, %v4143_v42  ;;  %v3082_v53 = vld [vmem:[%s3455_s23 + $0x1d0] sm:$0xff]  ;;  %vm1127_vm7 = vcmp.le.f32.partialorder %v1111_v3, 0.04 }
 0x1d6   : > { %v4403_v8 = vpop.permute.xlu1 %1450  ;;  %v720_v51 = vsel %vm716_vm15, 16843009, %v5083_v52  ;;  %v980_v13 = vsub.f32 %v5210_v44, %v4025_v29  ;;  %v991_v45 = vmul.f32 %v975_v59, %v975_v59  ;;  %v977_v17 = vsub.f32 %v5211_v41, %v4025_v29  ;;  %v5214_v59 = vld [vmem:[#allocation85_spill] sm:$0xff] }
 0x1d7   : > { %v1096_v15 = vmul.f32 %v1080_v11, %v1080_v11  ;;  %vm1125_vm0 = vcmp.le.f32.partialorder %v1109_v28, 0.04  ;;  %724 = vst [vmem:[%s3466_s13 + $0x18] sm:$0xff] %v720_v51  ;;  %v1005_v28 = vadd.f32 %v989_v55, %v4283_v26  ;;  %v979_v16 = vsub.f32 %v5212_v21, %v4025_v29 }
 0x1d8   : > { %3064 = vset.pattern.permute.xlu1 %v5103_v14  ;;  %v1035_v23 = vpop.permute.xlu0 %1034  ;;  %vm4414_vm6 = vmpackc.low %vm1126_vm1, %vm1125_vm0  ;;  %v1115_v3 = vadd.f32 %v1099_v60, %v1003_v40  ;;  %v1087_v55 = vsub.f32 %v5213_v31, %v4034_v54  ;;  %vm1129_vm11 = vcmp.le.f32.partialorder %v1113_v12, 0.04  ;;  %v5216_v60 = vld [vmem:[#allocation79_spill] sm:$0xff] }
 0x1d9   : > { %v1112_v0 = vadd.f32 %v1096_v15, %v4343_v6  ;;  %v1082_v42 = vsub.f32 %v1035_v23, %v4034_v54  ;;  %1814 = vperm.xlu1 %3064, %v3082_v53   ;;  %2817 = vmatprep.subr.msk.bf16.mxu0 %vm4414_vm6, %v3266_v63  ;;  %v5209_v6 = vld [vmem:[#allocation81_spill] sm:$0xff]  ;;  %v4449_v15 = vld [vmem:[%s3455_s23 + $0x150] sm:$0xff]  ;;  %v1089_v23 = vsub.f32 %v5214_v59, %v4034_v54 }
 0x1da   : > { %v4430_v10 = vpop.permute.xlu1 %1454  ;;  %2818 = vmatpush3.bf16.msk.msra.mxu0 %vm4234_vm5, %v3266_v63  ;;  %v1085_v7 = vsub.f32 %v5209_v6, %v4034_v54  ;;  %v5215_v53 = vld [vmem:[#allocation77_spill] sm:$0xff]  ;;  %v1402_v6 = vsub.f32 %v5216_v60, %v4025_v29  ;;  %v1103_v21 = vmul.f32 %v1087_v55, %v1087_v55  ;;  %vm1131_vm0 = vcmp.le.f32.partialorder %v1115_v3, 0.04 }
 0x1db   : > { %v1098_v11 = vmul.f32 %v1082_v42, %v1082_v42  ;;  %vm1128_vm8 = vcmp.le.f32.partialorder %v1112_v0, 0.04  ;;  %v996_v0 = vmul.f32 %v980_v13, %v980_v13  ;;  %v993_v42 = vmul.f32 %v977_v17, %v977_v17  ;;  %v5220_v13 = vld [vmem:[#allocation54_spill] sm:$0xff] }
 0x1dc   : > { %vm1142_vm9 = vmpackc.low %vm1128_vm8, %vm1127_vm7  ;;  %v1043_v62 = vpop.permute.xlu0 %1042  ;;  %v1837_v40 = vsub.f32 %v5215_v53, %v4025_v29  ;;  %v1007_v17 = vadd.f32 %v991_v45, %v4306_v5  ;;  %v1418_v59 = vmul.f32 %v1402_v6, %v1402_v6  ;;  %v1949_v60 = vsub.f32 %v4376_v49, %v4034_v54 }
 0x1dd   : > { %v1114_v51 = vadd.f32 %v1098_v11, %v4372_v20  ;;  %vm1143_vm5 = vmpackc.even %vm1142_vm9, %vm4414_vm6  ;;  %v1084_v26 = vsub.f32 %v1043_v62, %v4034_v54  ;;  %1378 = vperm.xlu1 %3064, %v4449_v15   ;;  %2819 = vmatprep.subr.msk.bf16.mxu0 %vm1142_vm9, %v3266_v63  ;;  %v1101_v20 = vmul.f32 %v1085_v7, %v1085_v7  ;;  %v5219_v7 = vld [vmem:[#allocation87_spill] sm:$0xff] }
 0x1de   : > { %v1153_v9 = vsel %vm1143_vm5, 16843009, %v5083_v52  ;;  %2820 = vmatpush3.bf16.msk.msra.mxu0 %vm4222_vm4, %v3266_v63  ;;  %v1091_v11 = vsub.f32 %v5219_v7, %v4034_v54  ;;  %v995_v62 = vmul.f32 %v979_v16, %v979_v16  ;;  %v1009_v31 = vadd.f32 %v993_v42, %v4308_v39 }
 0x1df   : > { %vm1130_vm15 = vcmp.le.f32.partialorder %v1114_v51, 0.04  ;;  %1157 = vst [vmem:[%s3466_s13 + $0x20] sm:$0xff] %v1153_v9  ;;  %v1100_v57 = vmul.f32 %v1084_v26, %v1084_v26  ;;  %v4462_v19 = vpop.permute.xlu1 %1678  ;;  %v1117_v51 = vadd.f32 %v1101_v20, %v1005_v28  ;;  %v1105_v26 = vmul.f32 %v1089_v23, %v1089_v23  ;;  %v3084_v23 = vld [vmem:[%s3455_s23 + $0x1d8] sm:$0xff] }
 0x1e0   : > { %v1051_v58 = vpop.permute.xlu0 %1050  ;;  %vm4468_vm4 = vmpackc.low %vm1130_vm15, %vm1129_vm11  ;;  %v1853_v9 = vmul.f32 %v1837_v40, %v1837_v40  ;;  %v1107_v16 = vmul.f32 %v1091_v11, %v1091_v11  ;;  %v1010_v39 = vadd.f32 %v4428_v37, %v4174_v48  ;;  %v1011_v3 = vadd.f32 %v995_v62, %v4334_v56  ;;  %v5222_v37 = vld [vmem:[#allocation32_spill] sm:$0xff] }
 0x1e1   : > { %v1116_v44 = vadd.f32 %v1100_v57, %v4385_v27  ;;  %v1086_v41 = vsub.f32 %v1051_v58, %v4034_v54  ;;  %1382 = vperm.xlu1 %3064, %v5220_v13   ;;  %2821 = vmatprep.subr.msk.bf16.mxu0 %vm4468_vm4, %v3266_v63  ;;  %v5221_v57 = vld [vmem:[#allocation82_spill] sm:$0xff]  ;;  %v1119_v55 = vadd.f32 %v1103_v21, %v1007_v17  ;;  %vm1133_vm8 = vcmp.le.f32.partialorder %v1117_v51, 0.04  ;;  %v5226_v13 = vld [vmem:[#allocation92_spill] sm:$0xff] }
 0x1e2   : > { %2822 = vmatpush3.bf16.msk.msra.mxu0 %vm4277_vm10, %v3266_v63  ;;  %v1840_v53 = vsub.f32 %v5221_v57, %v4025_v29  ;;  %v1012_v40 = vadd.f32 %v996_v0, %v4183_v1  ;;  %v1869_v48 = vadd.f32 %v1853_v9, %v4226_v25  ;;  %v1434_v56 = vadd.f32 %v1418_v59, %v5222_v37  ;;  %v5225_v25 = vld [vmem:[#allocation90_spill] sm:$0xff]  ;;  %v4541_v21 = vld [vmem:[%s3455_s23 + $0x1e0] sm:$0xff] }
 0x1e3   : > { %vm1132_vm1 = vcmp.le.f32.partialorder %v1116_v44, 0.04  ;;  %v1102_v27 = vmul.f32 %v1086_v41, %v1086_v41  ;;  %v4515_v7 = vadd.f32 %v1107_v16, %v1011_v3  ;;  %v1305_v49 = vsub.f32 %v5225_v25, %v4005_v33 }
 0x1e4   : > { %v4487_v5 = vpop.permute.xlu1 %1782  ;;  %v1059_v45 = vpop.permute.xlu0 %1058  ;;  %vm1145_vm6 = vmpackc.low %vm1132_vm1, %vm1131_vm0  ;;  %v4513_v61 = vmul.f32 %v1840_v53, %v1840_v53  ;;  %v1401_v0 = vsub.f32 %v4347_v34, %v4025_v29  ;;  %v1514_v44 = vsub.f32 %v4430_v10, %v4034_v54  ;;  %v1307_v34 = vsub.f32 %v5226_v13, %v4005_v33 }
 0x1e5   : > { %v1118_v18 = vadd.f32 %v1102_v27, %v4408_v24  ;;  %v1088_v28 = vsub.f32 %v1059_v45, %v4034_v54  ;;  %3065 = vset.pattern.permute.xlu1 %v5093_v32  ;;  %vm1146_vm10 = vmpackc.even %vm1145_vm6, %vm4468_vm4  ;;  %2823 = vmatprep.subr.msk.bf16.mxu0 %vm1145_vm6, %v3266_v63  ;;  %v1121_v24 = vadd.f32 %v1105_v26, %v1009_v31  ;;  %vm1139_vm4 = vcmp.le.f32.partialorder %v4515_v7, 0.04 }
 0x1e6   : > { %v1154_v20 = vsel %vm1146_vm10, 16843009, %v5083_v52  ;;  %1930 = vperm.xlu1 %3065, %v3084_v23   ;;  %2824 = vmatpush3.bf16.msk.msra.mxu0 %vm4291_vm12, %v3266_v63  ;;  %vm1135_vm12 = vcmp.le.f32.partialorder %v1119_v55, 0.04  ;;  %v1742_v17 = vsub.f32 %v4289_v46, %v4005_v33  ;;  %v1965_v10 = vmul.f32 %v1949_v60, %v1949_v60  ;;  %v5229_v60 = vld [vmem:[#allocation25_spill] sm:$0xff] }
 0x1e7   : > { %vm1134_vm7 = vcmp.le.f32.partialorder %v1118_v18, 0.04  ;;  %v1104_v42 = vmul.f32 %v1088_v28, %v1088_v28  ;;  %1158 = vst [vmem:[%s3466_s13 + $0x28] sm:$0xff] %v1154_v20  ;;  %vm1137_vm11 = vcmp.le.f32.partialorder %v1121_v24, 0.04  ;;  %v1321_v46 = vmul.f32 %v1305_v49, %v1305_v49  ;;  %v3087_v18 = vld [vmem:[%s3455_s23 + $0x160] sm:$0xff] }
 0x1e8   : > { %v1347_v6 = vpop.permute.xlu1 %1346  ;;  %v1067_v58 = vpop.permute.xlu0 %1066  ;;  %vm4509_vm9 = vmpackc.low %vm1134_vm7, %vm1133_vm8  ;;  %v1530_v27 = vmul.f32 %v1514_v44, %v1514_v44  ;;  %v1839_v9 = vsub.f32 %v4487_v5, %v4025_v29  ;;  %v1323_v57 = vmul.f32 %v1307_v34, %v1307_v34  ;;  %v1758_v53 = vmul.f32 %v1742_v17, %v1742_v17  ;;  %v3085_v17 = vld [vmem:[%s3455_s23 + $0x1e8] sm:$0xff] }
 0x1e9   : > { %v1120_v11 = vadd.f32 %v1104_v42, %v4419_v38  ;;  %v1090_v1 = vsub.f32 %v1067_v58, %v4034_v54  ;;  %2825 = vmatprep.subr.msk.bf16.mxu0 %vm4509_vm9, %v3266_v63  ;;  %v1838_v38 = vsub.f32 %v4318_v4, %v4025_v29  ;;  %v1744_v4 = vsub.f32 %v4462_v19, %v4005_v33 }
 0x1ea   : > { %1490 = vperm.xlu1 %3065, %v4449_v15   ;;  %2826 = vmatpush3.bf16.msk.msra.mxu0 %vm4330_vm2, %v3266_v63  ;;  %v1513_v15 = vsub.f32 %v4403_v8, %v4034_v54  ;;  %v1417_v8 = vmul.f32 %v1401_v0, %v1401_v0  ;;  %v1981_v30 = vadd.f32 %v1965_v10, %v1869_v48 }
 0x1eb   : > { %vm1136_vm5 = vcmp.le.f32.partialorder %v1120_v11, 0.04  ;;  %v1106_v41 = vmul.f32 %v1090_v1, %v1090_v1  ;;  %v1854_v19 = vmul.f32 %v1838_v38, %v1838_v38  ;;  %v1760_v28 = vmul.f32 %v1744_v4, %v1744_v4 }
 0x1ec   : > { %v1351_v62 = vpop.permute.xlu1 %1350  ;;  %v1075_v50 = vpop.permute.xlu0 %1074  ;;  %vm1148_vm2 = vmpackc.low %vm1136_vm5, %vm1135_vm12  ;;  %v1529_v45 = vmul.f32 %v1513_v15, %v1513_v15  ;;  %v1433_v20 = vadd.f32 %v1417_v8, %v1321_v46  ;;  %v1546_v23 = vadd.f32 %v1530_v27, %v1434_v56  ;;  %v1855_v48 = vmul.f32 %v1839_v9, %v1839_v9  ;;  %v3086_v8 = vld [vmem:[%s3455_s23 + $0x168] sm:$0xff] }
 0x1ed   : > { %v1122_v51 = vadd.f32 %v1106_v41, %v1010_v39  ;;  %v1092_v26 = vsub.f32 %v1075_v50, %v4034_v54  ;;  %vm1149_vm15 = vmpackc.even %vm1148_vm2, %vm4509_vm9  ;;  %2827 = vmatprep.subr.msk.bf16.mxu0 %vm1148_vm2, %v3266_v63  ;;  %v1403_v39 = vsub.f32 %v1347_v6, %v4025_v29  ;;  %v1404_v24 = vsub.f32 %v1351_v62, %v4025_v29 }
 0x1ee   : > { %v1155_v31 = vsel %vm1149_vm15, 16843009, %v5083_v52  ;;  %3066 = vset.pattern.permute.xlu1 %v5083_v52  ;;  %2828 = vmatpush3.bf16.msk.msra.mxu0 %vm4337_vm3, %v3266_v63  ;;  %v1870_v37 = vadd.f32 %v1854_v19, %v1758_v53  ;;  %v1308_v6 = vsub.f32 %v5229_v60, %v4005_v33  ;;  %v1545_v58 = vadd.f32 %v1529_v45, %v1433_v20  ;;  %v5234_v45 = vld [vmem:[#allocation50_spill] sm:$0xff]  ;;  %v5236_v60 = vld [vmem:[#allocation35_spill] sm:$0xff] }
 0x1ef   : > { %vm1138_vm0 = vcmp.le.f32.partialorder %v1122_v51, 0.04  ;;  %v1108_v59 = vmul.f32 %v1092_v26, %v1092_v26  ;;  %1159 = vst [vmem:[%s3466_s13 + $0x30] sm:$0xff] %v1155_v31  ;;  %1723 = vperm.xlu1 %3066, %v4541_v21   ;;  %vm1997_vm10 = vcmp.le.f32.partialorder %v1981_v30, 0.04  ;;  %v1872_v36 = vadd.f32 %v4513_v61, %v1760_v28 }
 0x1f0   : > { %v1891_v16 = vpop.permute.xlu0 %1890  ;;  %vm4560_vm1 = vmpackc.low %vm1138_vm0, %vm1137_vm11  ;;  %v1419_v11 = vmul.f32 %v1403_v39, %v1403_v39  ;;  %v1420_v0 = vmul.f32 %v1404_v24, %v1404_v24  ;;  %vm1562_vm7 = vcmp.le.f32.partialorder %v1546_v23, 0.04  ;;  %v1871_v61 = vadd.f32 %v1855_v48, %v4228_v35 }
 0x1f1   : > { %v1124_v3 = vadd.f32 %v1108_v59, %v1012_v40  ;;  %v1950_v5 = vsub.f32 %v1891_v16, %v4034_v54  ;;  %v1899_v55 = vpop.permute.xlu1 %1898  ;;  %2829 = vmatprep.subr.msk.bf16.mxu0 %vm4560_vm1, %v3266_v63  ;;  %v1324_v13 = vmul.f32 %v1308_v6, %v1308_v6  ;;  %vm1561_vm12 = vcmp.le.f32.partialorder %v1545_v58, 0.04  ;;  %v3088_v58 = vld [vmem:[%s3455_s23 + $0x1f8] sm:$0xff] }
 0x1f2   : > { %v1952_v42 = vsub.f32 %v1899_v55, %v4034_v54  ;;  %2830 = vmatpush3.bf16.msk.msra.mxu0 %vm4380_vm13, %v3266_v63  ;;  %v1435_v22 = vadd.f32 %v1419_v11, %v1323_v57  ;;  %v1746_v16 = vsub.f32 %v5234_v45, %v4005_v33  ;;  %v1309_v6 = vsub.f32 %v5236_v60, %v4005_v33 }
 0x1f3   : > { %vm1140_vm3 = vcmp.le.f32.partialorder %v1124_v3, 0.04  ;;  %v1966_v40 = vmul.f32 %v1950_v5, %v1950_v5  ;;  %3067 = vset.pattern.permute.xlu1 %v5103_v14  ;;  %v1436_v4 = vadd.f32 %v1420_v0, %v1324_v13  ;;  %v3089_v13 = vld [vmem:[%s3455_s23 + $0x1f0] sm:$0xff] }
 0x1f4   : > { %v1968_v12 = vmul.f32 %v1952_v42, %v1952_v42  ;;  %1822 = vperm.xlu1 %3067, %v4541_v21   ;;  %v1895_v56 = vpop.permute.xlu0 %1894  ;;  %vm1151_vm6 = vmpackc.low %vm1140_vm3, %vm1139_vm4  ;;  %v1762_v3 = vmul.f32 %v1746_v16, %v1746_v16  ;;  %v5235_v42 = vld [vmem:[#allocation84_spill] sm:$0xff] }
 0x1f5   : > { %v1951_v1 = vsub.f32 %v1895_v56, %v4034_v54  ;;  %v1459_v25 = vpop.permute.xlu1 %1458  ;;  %vm1152_vm13 = vmpackc.even %vm1151_vm6, %vm4560_vm1  ;;  %2831 = vmatprep.subr.msk.bf16.mxu0 %vm1151_vm6, %v3266_v63  ;;  %v1982_v49 = vadd.f32 %v1966_v40, %v1870_v37  ;;  %v1405_v48 = vsub.f32 %v5235_v42, %v4025_v29 }
 0x1f6   : > { %v1515_v44 = vsub.f32 %v1459_v25, %v4034_v54  ;;  %v1156_v7 = vsel %vm1152_vm13, 16843009, %v5083_v52  ;;  %2832 = vmatpush3.bf16.msk.msra.mxu0 %vm4390_vm14, %v3266_v63  ;;  %v1984_v38 = vadd.f32 %v1968_v12, %v1872_v36  ;;  %vm4603_vm14 = vmpackc.low %vm1562_vm7, %vm1561_vm12 }
 0x1f7   : > { %v1967_v41 = vmul.f32 %v1951_v1, %v1951_v1  ;;  %1160 = vst [vmem:[%s3466_s13 + $0x38] sm:$0xff] %v1156_v7  ;;  %vm1998_vm8 = vcmp.le.f32.partialorder %v1982_v49, 0.04  ;;  %v1421_v25 = vmul.f32 %v1405_v48, %v1405_v48  ;;  %v5237_v49 = vld [vmem:[#allocation27_spill] sm:$0xff] }
 0x1f8   : > { %v1531_v34 = vmul.f32 %v1515_v44, %v1515_v44  ;;  %1826 = vperm.xlu1 %3067, %v3085_v17   ;;  %v1463_v10 = vpop.permute.xlu0 %1462  ;;  %vm4594_vm9 = vmpackc.low %vm1998_vm8, %vm1997_vm10  ;;  %vm2000_vm11 = vcmp.le.f32.partialorder %v1984_v38, 0.04  ;;  %v1310_v0 = vsub.f32 %v5237_v49, %v4005_v33 }
 0x1f9   : > { %v1983_v62 = vadd.f32 %v1967_v41, %v1871_v61  ;;  %v1516_v35 = vsub.f32 %v1463_v10, %v4034_v54  ;;  %2839 = vmatprep.subr.msk.bf16.mxu1 %vm4594_vm9, %v3266_v63  ;;  %v1325_v61 = vmul.f32 %v1309_v6, %v1309_v6 }
 0x1fa   : > { %v1684_v51 = vpop.permute.xlu1 %1683  ;;  %2840 = vmatpush3.bf16.msk.msra.mxu1 %vm4603_vm14, %v3266_v63  ;;  %v1547_v26 = vadd.f32 %v1531_v34, %v1435_v22  ;;  %v1326_v15 = vmul.f32 %v1310_v0, %v1310_v0 }
 0x1fb   : > { %v1532_v46 = vmul.f32 %v1516_v35, %v1516_v35  ;;  %vm1999_vm5 = vcmp.le.f32.partialorder %v1983_v62, 0.04  ;;  %v1745_v5 = vsub.f32 %v1684_v51, %v4005_v33  ;;  %v1437_v10 = vadd.f32 %v1421_v25, %v1325_v61  ;;  %v3076_v61 = vld [vmem:[%s3462_s11] ss:$16 sps:$4 sm:$0x1f]  }
 0x1fc   : > { %vm2014_vm2 = vmpackc.low %vm2000_vm11, %vm1999_vm5  ;;  %1390 = vperm.xlu1 %3067, %v3086_v8   ;;  %vm1563_vm4 = vcmp.le.f32.partialorder %v1547_v26, 0.04  ;;  %v1907_v53 = vpop.permute.xlu0 %1906 }
 0x1fd   : > { %v1548_v27 = vadd.f32 %v1532_v46, %v1436_v4  ;;  %vm2015_vm15 = vmpackc.even %vm2014_vm2, %vm4594_vm9  ;;  %2841 = vmatprep.subr.msk.bf16.mxu1 %vm2014_vm2, %v3266_v63  ;;  %v1761_v40 = vmul.f32 %v1745_v5, %v1745_v5  ;;  %v3090_v4 = vld [vmem:[%s3455_s23 + $0x170] sm:$0xff]  ;;  %v3091_v46 = vld [vmem:[%s3455_s23 + $0x178] sm:$0xff] }
 0x1fe   : > { %v2025_v31 = vsel %vm2015_vm15, 16843009, %v5083_v52 }
 0x1ff   : > { %vm1564_vm0 = vcmp.le.f32.partialorder %v1548_v27, 0.04  ;;  %2029 = vst [vmem:[%s3466_s13 + $0x60] sm:$0xff] %v2025_v31  ;;  %v1791_v19 = vpop.permute.xlu1 %1790 }
 0x200   : > { %vm1578_vm1 = vmpackc.low %vm1564_vm0, %vm1563_vm4  ;;  %3068 = vset.pattern.permute.xlu1 %v5093_v32  ;;  %v1841_v30 = vsub.f32 %v1791_v19, %v4025_v29  ;;  %v1911_v19 = vpop.permute.xlu0 %1910 }
 0x201   : > { %vm1579_vm3 = vmpackc.even %vm1578_vm1, %vm4603_vm14  ;;  %1934 = vperm.xlu1 %3068, %v4541_v21   ;;  %2842 = vmatpush3.bf16.msk.msra.mxu1 %vm1578_vm1, %v3266_v63  ;;  %v1954_v21 = vsub.f32 %v1907_v53, %v4034_v54  ;;  %v1955_v45 = vsub.f32 %v1911_v19, %v4034_v54 }
 0x202   : > { %v1589_v9 = vsel %vm1579_vm3, 16843009, %v5083_v52  ;;  %v1857_v55 = vmul.f32 %v1841_v30, %v1841_v30 }
 0x203   : > { %1593 = vst [vmem:[%s3466_s13 + $0x40] sm:$0xff] %v1589_v9  ;;  %v1795_v59 = vpop.permute.xlu1 %1794  ;;  %v1970_v23 = vmul.f32 %v1954_v21, %v1954_v21  ;;  %v5243_v21 = vld [vmem:[#allocation86_spill] sm:$0xff] }
 0x204   : > { %v1842_v57 = vsub.f32 %v1795_v59, %v4025_v29  ;;  %v1873_v12 = vadd.f32 %v1857_v55, %v1761_v40  ;;  %v5242_v59 = vld [vmem:[#allocation53_spill] sm:$0xff]  ;;  %v1479_v30 = vpop.permute.xlu0 %1478 }
 0x205   : > { %1498 = vperm.xlu1 %3068, %v3087_v18   ;;  %v5245_v40 = vld [vmem:[#allocation37_spill] sm:$0xff] }
 0x206   : > { %v1858_v28 = vmul.f32 %v1842_v57, %v1842_v57  ;;  %v1747_v57 = vsub.f32 %v5242_v59, %v4005_v33 }
 0x207   : > { %v1359_v39 = vpop.permute.xlu1 %1358 }
 0x208   : > { %v1874_v20 = vadd.f32 %v1858_v28, %v1762_v3  ;;  %v1406_v36 = vsub.f32 %v1359_v39, %v4025_v29  ;;  %v1763_v28 = vmul.f32 %v1747_v57, %v1747_v57  ;;  %v1844_v39 = vsub.f32 %v5243_v21, %v4025_v29  ;;  %v5244_v3 = vld [vmem:[#allocation30_spill] sm:$0xff]  ;;  %v5248_v21 = vld [vmem:[#allocation40_spill] sm:$0xff] }
 0x209   : > { %1502 = vperm.xlu1 %3068, %v3086_v8   ;;  %v1312_v5 = vsub.f32 %v5244_v3, %v4005_v33 }
 0x20a   : > { %v1986_v56 = vadd.f32 %v1970_v23, %v1874_v20  ;;  %v1422_v38 = vmul.f32 %v1406_v36, %v1406_v36  ;;  %v1971_v20 = vmul.f32 %v1955_v45, %v1955_v45  ;;  %v1520_v23 = vsub.f32 %v1479_v30, %v4034_v54 }
 0x20b   : > { %v1860_v60 = vmul.f32 %v1844_v39, %v1844_v39  ;;  %v1328_v6 = vmul.f32 %v1312_v5, %v1312_v5  ;;  %v1313_v39 = vsub.f32 %v5248_v21, %v4005_v33 }
 0x20c   : > { %v1903_v24 = vpop.permute.xlu1 %1902  ;;  %vm2002_vm6 = vcmp.le.f32.partialorder %v1986_v56, 0.04  ;;  %v1438_v62 = vadd.f32 %v1422_v38, %v1326_v15  ;;  %v1536_v56 = vmul.f32 %v1520_v23, %v1520_v23  ;;  %v3078_v38 = vld [vmem:[%s3462_s11 + $0x4] ss:$16 sps:$4 sm:$0x1f]  }
 0x20d   : > { %v1953_v37 = vsub.f32 %v1903_v24, %v4034_v54  ;;  %3070 = vset.pattern.permute.xlu1 %v5083_v52  ;;  %2171 = vmatprep.mubr.bf16.mxu0 %v3078_v38  ;;  %v5253_v38 = vld [vmem:[#allocation57_spill] sm:$0xff] }
 0x20e   : > { %1738 = vperm.xlu1 %3070, %v3088_v58   ;;  %2172 = vmatmul.mubr.bf16.vlgmr.msra.gmra.mrb[0].mxu0 %v3076_v61 }
 0x20f   : > { %v1969_v11 = vmul.f32 %v1953_v37, %v1953_v37  ;;  %v1311_v37 = vsub.f32 %v5245_v40, %v4005_v33  ;;  %v1329_v40 = vmul.f32 %v1313_v39, %v1313_v39 }
 0x210   : > { %v1467_v1 = vpop.permute.xlu1 %1466 }
 0x211   : > { %v1985_v44 = vadd.f32 %v1969_v11, %v1873_v12  ;;  %v1517_v7 = vsub.f32 %v1467_v1, %v4034_v54  ;;  %v1327_v0 = vmul.f32 %v1311_v37, %v1311_v37 }
 0x212   : > { %3071 = vset.pattern.permute.xlu1 %v5103_v14 }
 0x213   : > { %vm2001_vm10 = vcmp.le.f32.partialorder %v1985_v44, 0.04  ;;  %v1533_v41 = vmul.f32 %v1517_v7, %v1517_v7  ;;  %1830 = vperm.xlu1 %3071, %v3089_v13  }
 0x214   : > { %v1471_v34 = vpop.permute.xlu1 %1470  ;;  %vm4643_vm13 = vmpackc.low %vm2002_vm6, %vm2001_vm10 }
 0x215   : > { %v1518_v22 = vsub.f32 %v1471_v34, %v4034_v54  ;;  %2843 = vmatprep.subr.msk.bf16.mxu1 %vm4643_vm13, %v3266_v63  ;;  %v1549_v35 = vadd.f32 %v1533_v41, %v1437_v10  ;;  %v3081_v10 = vld [vmem:[%s3462_s11 + $0xc] ss:$16 sps:$4 sm:$0x1f]  }
 0x216   : > { %2212 = vmatprep.mubr.bf16.mxu1 %v3081_v10 }
 0x217   : > { %v1534_v50 = vmul.f32 %v1518_v22, %v1518_v22  ;;  %3072 = vset.pattern.permute.xlu1 %v5083_v52  ;;  %vm1565_vm7 = vcmp.le.f32.partialorder %v1549_v35, 0.04 }
 0x218   : > { %1297 = vperm.xlu1 %3072, %v3090_v4  }
 0x219   : > { %v1550_v51 = vadd.f32 %v1534_v50, %v1438_v62  ;;  %v1699_v26 = vpop.permute.xlu1 %1698 }
 0x21a   : > { %v1748_v16 = vsub.f32 %v1699_v26, %v4005_v33 }
 0x21b   : > { %vm1566_vm8 = vcmp.le.f32.partialorder %v1550_v51, 0.04  ;;  %v5246_v51 = vld [vmem:[#allocation56_spill] sm:$0xff] }
 0x21c   : > { %1302 = vperm.xlu1 %3072, %v3091_v46   ;;  %vm4654_vm9 = vmpackc.low %vm1566_vm8, %vm1565_vm7  ;;  %v1764_v24 = vmul.f32 %v1748_v16, %v1748_v16  ;;  %v1750_v26 = vsub.f32 %v5246_v51, %v4005_v33 }
 0x21d   : > { %2844 = vmatpush3.bf16.msk.msra.mxu1 %vm4654_vm9, %v3266_v63 }
 0x21e   : > { %v1799_v27 = vpop.permute.xlu1 %1798  ;;  %v1876_v36 = vadd.f32 %v1860_v60, %v1764_v24 }
 0x21f   : > { %v1843_v31 = vsub.f32 %v1799_v27, %v4025_v29 }
 0x220   : > { %3074 = vset.pattern.permute.xlu1 %v5103_v14 }
 0x221   : > { %1398 = vperm.xlu1 %3074, %v3091_v46   ;;  %v1859_v53 = vmul.f32 %v1843_v31, %v1843_v31  ;;  %v1923_v46 = vpop.permute.xlu0 %1922 }
 0x222   : > { %v1363_v9 = vpop.permute.xlu1 %1362  ;;  %v1958_v27 = vsub.f32 %v1923_v46, %v4034_v54 }
 0x223   : > { %v1875_v55 = vadd.f32 %v1859_v53, %v1763_v28 }
 0x224   : > { %v1974_v57 = vmul.f32 %v1958_v27, %v1958_v27 }
 0x225   : > { %3075 = vset.pattern.permute.xlu1 %v5093_v32  ;;  %v1407_v32 = vsub.f32 %v1363_v9, %v4025_v29  ;;  %v1987_v12 = vadd.f32 %v1971_v20, %v1875_v55  ;;  %v1766_v9 = vmul.f32 %v1750_v26, %v1750_v26 }
 0x226   : > { %1946 = vperm.xlu1 %3075, %v3088_v58   ;;  %v1367_v18 = vpop.permute.xlu1 %1366 }
 0x227   : > { %v1408_v14 = vsub.f32 %v1367_v18, %v4025_v29  ;;  %v1423_v11 = vmul.f32 %v1407_v32, %v1407_v32  ;;  %vm2003_vm12 = vcmp.le.f32.partialorder %v1987_v12, 0.04  ;;  %v5247_v18 = vld [vmem:[#allocation88_spill] sm:$0xff]  ;;  %v1314_v32 = vsub.f32 %v4202_v2, %v4005_v33 }
 0x228   : > { %v1409_v30 = vsub.f32 %v5247_v18, %v4025_v29 }
 0x229   : > { %v1424_v42 = vmul.f32 %v1408_v14, %v1408_v14  ;;  %v1439_v41 = vadd.f32 %v1423_v11, %v1327_v0 }
 0x22a   : > { %1506 = vperm.xlu1 %3075, %v3090_v4   ;;  %v1425_v24 = vmul.f32 %v1409_v30, %v1409_v30 }
 0x22b   : > { %v1915_v48 = vpop.permute.xlu1 %1914  ;;  %v1440_v1 = vadd.f32 %v1424_v42, %v1328_v6 }
 0x22c   : > { %v1956_v58 = vsub.f32 %v1915_v48, %v4034_v54  ;;  %v1441_v12 = vadd.f32 %v1425_v24, %v1329_v40 }
 0x22d   : > { %v1552_v13 = vadd.f32 %v1536_v56, %v1440_v1  ;;  %v1330_v56 = vmul.f32 %v1314_v32, %v1314_v32 }
 0x22e   : > { %v1972_v25 = vmul.f32 %v1956_v58, %v1956_v58  ;;  %v5256_v58 = vld [vmem:[#allocation58_spill] sm:$0xff] }
 0x22f   : > { %v1475_v49 = vpop.permute.xlu1 %1474  ;;  %vm1568_vm2 = vcmp.le.f32.partialorder %v1552_v13, 0.04  ;;  %v1927_v13 = vpop.permute.xlu0 %1926 }
 0x230   : > { %v1988_v44 = vadd.f32 %v1972_v25, %v1876_v36  ;;  %v1519_v7 = vsub.f32 %v1475_v49, %v4034_v54 }
 0x232   : > { %vm2004_vm14 = vcmp.le.f32.partialorder %v1988_v44, 0.04  ;;  %v1535_v34 = vmul.f32 %v1519_v7, %v1519_v7 }
 0x233   : > { %vm2017_vm5 = vmpackc.low %vm2004_vm14, %vm2003_vm12 }
 0x234   : > { %v1551_v15 = vadd.f32 %v1535_v34, %v1439_v41  ;;  %v1704_v22 = vpop.permute.xlu1 %1703  ;;  %vm2018_vm11 = vmpackc.even %vm2017_vm5, %vm4643_vm13  ;;  %2845 = vmatprep.subr.msk.bf16.mxu1 %vm2017_vm5, %v3266_v63  ;;  %v1751_v41 = vsub.f32 %v5253_v38, %v4005_v33 }
 0x235   : > { %v2026_v62 = vsel %vm2018_vm11, 16843009, %v5083_v52  ;;  %v1749_v59 = vsub.f32 %v1704_v22, %v4005_v33  ;;  %v5254_v22 = vld [vmem:[#allocation89_spill] sm:$0xff] }
 0x236   : > { %vm1567_vm15 = vcmp.le.f32.partialorder %v1551_v15, 0.04  ;;  %2030 = vst [vmem:[%s3466_s13 + $0x68] sm:$0xff] %v2026_v62  ;;  %v1848_v62 = vsub.f32 %v5254_v22, %v4025_v29 }
 0x237   : > { %vm1581_vm4 = vmpackc.low %vm1568_vm2, %vm1567_vm15  ;;  %v1765_v28 = vmul.f32 %v1749_v59, %v1749_v59 }
 0x238   : > { %vm1582_vm0 = vmpackc.even %vm1581_vm4, %vm4654_vm9  ;;  %2846 = vmatpush3.bf16.msk.msra.mxu1 %vm1581_vm4, %v3266_v63 }
 0x239   : > { %v1590_v35 = vsel %vm1582_vm0, 16843009, %v5083_v52  ;;  %v1807_v50 = vpop.permute.xlu1 %1806 }
 0x23a   : > { %1594 = vst [vmem:[%s3466_s13 + $0x48] sm:$0xff] %v1590_v35  ;;  %v1845_v31 = vsub.f32 %v1807_v50, %v4025_v29  ;;  %v1767_v50 = vmul.f32 %v1751_v41, %v1751_v41 }
 0x23c   : > { %v1861_v53 = vmul.f32 %v1845_v31, %v1845_v31  ;;  %v5255_v31 = vld [vmem:[#allocation42_spill] sm:$0xff] }
 0x23d   : > { %v1811_v17 = vpop.permute.xlu1 %1810 }
 0x23e   : > { %v1846_v4 = vsub.f32 %v1811_v17, %v4025_v29  ;;  %v1877_v3 = vadd.f32 %v1861_v53, %v1765_v28  ;;  %v1316_v17 = vsub.f32 %v4232_v47, %v4005_v33 }
 0x240   : > { %v1862_v19 = vmul.f32 %v1846_v4, %v1846_v4  ;;  %v1959_v4 = vsub.f32 %v1927_v13, %v4034_v54 }
 0x241   : > { %v1375_v8 = vpop.permute.xlu1 %1374 }
 0x242   : > { %v1878_v45 = vadd.f32 %v1862_v19, %v1766_v9  ;;  %v1410_v5 = vsub.f32 %v1375_v8, %v4025_v29  ;;  %v1315_v19 = vsub.f32 %v5255_v31, %v4005_v33  ;;  %v1864_v8 = vmul.f32 %v1848_v62, %v1848_v62  ;;  %v1495_v9 = vpop.permute.xlu0 %1494 }
 0x243   : > { %v1975_v53 = vmul.f32 %v1959_v4, %v1959_v4 }
 0x244   : > { %v1990_v20 = vadd.f32 %v1974_v57, %v1878_v45  ;;  %v1426_v37 = vmul.f32 %v1410_v5, %v1410_v5  ;;  %v1332_v57 = vmul.f32 %v1316_v17, %v1316_v17  ;;  %v1524_v45 = vsub.f32 %v1495_v9, %v4034_v54 }
 0x245   : > { %v1331_v21 = vmul.f32 %v1315_v19, %v1315_v19 }
 0x246   : > { %v1919_v16 = vpop.permute.xlu1 %1918  ;;  %vm2006_vm3 = vcmp.le.f32.partialorder %v1990_v20, 0.04  ;;  %v1442_v2 = vadd.f32 %v1426_v37, %v1330_v56 }
 0x247   : > { %v1957_v14 = vsub.f32 %v1919_v16, %v4034_v54 }
 0x249   : > { %v1973_v55 = vmul.f32 %v1957_v14, %v1957_v14 }
 0x24a   : > { %v1483_v23 = vpop.permute.xlu1 %1482 }
 0x24b   : > { %v1989_v42 = vadd.f32 %v1973_v55, %v1877_v3  ;;  %v1521_v48 = vsub.f32 %v1483_v23, %v4034_v54  ;;  %v1540_v3 = vmul.f32 %v1524_v45, %v1524_v45 }
 0x24d   : > { %vm2005_vm1 = vcmp.le.f32.partialorder %v1989_v42, 0.04  ;;  %v1537_v60 = vmul.f32 %v1521_v48, %v1521_v48 }
 0x24e   : > { %v1487_v6 = vpop.permute.xlu1 %1486  ;;  %vm4707_vm6 = vmpackc.low %vm2006_vm3, %vm2005_vm1 }
 0x24f   : > { %v1522_v36 = vsub.f32 %v1487_v6, %v4034_v54  ;;  %2847 = vmatprep.subr.msk.bf16.mxu1 %vm4707_vm6, %v3266_v63  ;;  %v1553_v11 = vadd.f32 %v1537_v60, %v1441_v12  ;;  %v1754_v12 = vsub.f32 %v5256_v58, %v4005_v33 }
 0x251   : > { %v1538_v1 = vmul.f32 %v1522_v36, %v1522_v36  ;;  %vm1569_vm10 = vcmp.le.f32.partialorder %v1553_v11, 0.04  ;;  %v1939_v11 = vpop.permute.xlu0 %1938 }
 0x253   : > { %v1554_v25 = vadd.f32 %v1538_v1, %v1442_v2  ;;  %v1719_v49 = vpop.permute.xlu1 %1718  ;;  %v1770_v1 = vmul.f32 %v1754_v12, %v1754_v12 }
 0x254   : > { %v1752_v34 = vsub.f32 %v1719_v49, %v4005_v33 }
 0x255   : > { %vm1570_vm13 = vcmp.le.f32.partialorder %v1554_v25, 0.04  ;;  %v1962_v25 = vsub.f32 %v1939_v11, %v4034_v54 }
 0x256   : > { %vm4715_vm7 = vmpackc.low %vm1570_vm13, %vm1569_vm10  ;;  %v1768_v26 = vmul.f32 %v1752_v34, %v1752_v34 }
 0x257   : > { %2848 = vmatpush3.bf16.msk.msra.mxu1 %vm4715_vm7, %v3266_v63  ;;  %v1978_v41 = vmul.f32 %v1962_v25, %v1962_v25  ;;  %v5265_v25 = vld [vmem:[#allocation28_spill] sm:$0xff] }
 0x258   : > { %v1815_v44 = vpop.permute.xlu1 %1814  ;;  %v1880_v18 = vadd.f32 %v1864_v8, %v1768_v26 }
 0x259   : > { %v1847_v7 = vsub.f32 %v1815_v44, %v4025_v29 }
 0x25b   : > { %v1863_v10 = vmul.f32 %v1847_v7, %v1847_v7 }
 0x25c   : > { %v1379_v61 = vpop.permute.xlu1 %1378 }
 0x25d   : > { %v1411_v51 = vsub.f32 %v1379_v61, %v4025_v29  ;;  %v1879_v46 = vadd.f32 %v1863_v10, %v1767_v50  ;;  %v5257_v61 = vld [vmem:[#allocation23_spill] sm:$0xff]  ;;  %v5258_v10 = vld [vmem:[#allocation44_spill] sm:$0xff] }
 0x25e   : > { %v1413_v38 = vsub.f32 %v5257_v61, %v4025_v29 }
 0x25f   : > { %v1427_v47 = vmul.f32 %v1411_v51, %v1411_v51  ;;  %v1991_v14 = vadd.f32 %v1975_v53, %v1879_v46  ;;  %v1318_v51 = vsub.f32 %v4261_v43, %v4005_v33 }
 0x260   : > { %v1383_v15 = vpop.permute.xlu1 %1382  ;;  %v1429_v4 = vmul.f32 %v1413_v38, %v1413_v38 }
 0x261   : > { %v1412_v35 = vsub.f32 %v1383_v15, %v4025_v29  ;;  %v1443_v20 = vadd.f32 %v1427_v47, %v1331_v21  ;;  %vm2007_vm9 = vcmp.le.f32.partialorder %v1991_v14, 0.04  ;;  %v1317_v15 = vsub.f32 %v5258_v10, %v4005_v33 }
 0x263   : > { %v1428_v27 = vmul.f32 %v1412_v35, %v1412_v35 }
 0x265   : > { %v1931_v59 = vpop.permute.xlu1 %1930  ;;  %v1444_v30 = vadd.f32 %v1428_v27, %v1332_v57  ;;  %v1333_v27 = vmul.f32 %v1317_v15, %v1317_v15  ;;  %v1334_v57 = vmul.f32 %v1318_v51, %v1318_v51 }
 0x266   : > { %v1960_v16 = vsub.f32 %v1931_v59, %v4034_v54 }
 0x267   : > { %v1556_v24 = vadd.f32 %v1540_v3, %v1444_v30  ;;  %v1445_v59 = vadd.f32 %v1429_v4, %v1333_v27  ;;  %v5263_v3 = vld [vmem:[#allocation59_spill] sm:$0xff] }
 0x268   : > { %v1976_v28 = vmul.f32 %v1960_v16, %v1960_v16 }
 0x269   : > { %v1491_v39 = vpop.permute.xlu1 %1490  ;;  %vm1572_vm11 = vcmp.le.f32.partialorder %v1556_v24, 0.04 }
 0x26a   : > { %v1992_v5 = vadd.f32 %v1976_v28, %v1880_v18  ;;  %v1523_v55 = vsub.f32 %v1491_v39, %v4034_v54 }
 0x26c   : > { %vm2008_vm8 = vcmp.le.f32.partialorder %v1992_v5, 0.04  ;;  %v1539_v23 = vmul.f32 %v1523_v55, %v1523_v55  ;;  %v1755_v5 = vsub.f32 %v5263_v3, %v4005_v33  ;;  %v1943_v55 = vpop.permute.xlu0 %1942 }
 0x26d   : > { %vm2020_vm12 = vmpackc.low %vm2008_vm8, %vm2007_vm9 }
 0x26e   : > { %v1555_v32 = vadd.f32 %v1539_v23, %v1443_v20  ;;  %v1724_v42 = vpop.permute.xlu1 %1723  ;;  %vm2021_vm14 = vmpackc.even %vm2020_vm12, %vm4707_vm6  ;;  %2849 = vmatprep.subr.msk.bf16.mxu1 %vm2020_vm12, %v3266_v63 }
 0x26f   : > { %v2027_v48 = vsel %vm2021_vm14, 16843009, %v5083_v52  ;;  %v1753_v49 = vsub.f32 %v1724_v42, %v4005_v33  ;;  %v5264_v42 = vld [vmem:[#allocation36_spill] sm:$0xff] }
 0x270   : > { %vm1571_vm5 = vcmp.le.f32.partialorder %v1555_v32, 0.04  ;;  %2031 = vst [vmem:[%s3466_s13 + $0x70] sm:$0xff] %v2027_v48  ;;  %v1771_v32 = vmul.f32 %v1755_v5, %v1755_v5  ;;  %v1852_v48 = vsub.f32 %v5264_v42, %v4025_v29 }
 0x271   : > { %vm1584_vm2 = vmpackc.low %vm1572_vm11, %vm1571_vm5  ;;  %v1769_v13 = vmul.f32 %v1753_v49, %v1753_v49  ;;  %v1415_v49 = vsub.f32 %v5265_v25, %v4025_v29  ;;  %v2241_v25 = vld [vmem:[%s5019_s3 + $0x38] sm:$0xff] (!%p2726_p13) }
 0x272   : > { %vm1585_vm15 = vmpackc.even %vm1584_vm2, %vm4715_vm7  ;;  %2850 = vmatpush3.bf16.msk.msra.mxu1 %vm1584_vm2, %v3266_v63  ;;  %vm2256_vm2 = vcmask (!%p2726_p13), 72704  }
 0x273   : > { %v1591_v40 = vsel %vm1585_vm15, 16843009, %v5083_v52  ;;  %v1823_v37 = vpop.permute.xlu1 %1822  ;;  %vm2305_vm15 = vcmask (!%p2726_p13), 1040384  }
 0x274   : > { %1595 = vst [vmem:[%s3466_s13 + $0x50] sm:$0xff] %v1591_v40  ;;  %v1849_v56 = vsub.f32 %v1823_v37, %v4025_v29  ;;  %v1963_v40 = vsub.f32 %v1943_v55, %v4034_v54  ;;  %v5266_v55 = vld [vmem:[#allocation80_spill] sm:$0xff] (!%p2726_p13) }
 0x276   : > { %v1865_v0 = vmul.f32 %v1849_v56, %v1849_v56  ;;  %v1979_v11 = vmul.f32 %v1963_v40, %v1963_v40  ;;  %v2243_v40 = vld [vmem:[%s5019_s3 + $0x48] sm:$0xff] (!%p2726_p13) }
 0x277   : > { %v1827_v60 = vpop.permute.xlu1 %1826 }
 0x278   : > { %v1850_v6 = vsub.f32 %v1827_v60, %v4025_v29  ;;  %v1881_v22 = vadd.f32 %v1865_v0, %v1769_v13 }
 0x27a   : > { %v1866_v36 = vmul.f32 %v1850_v6, %v1850_v6  ;;  %v1511_v6 = vpop.permute.xlu0 %1510 }
 0x27b   : > { %v1391_v2 = vpop.permute.xlu1 %1390  ;;  %v1528_v0 = vsub.f32 %v1511_v6, %v4034_v54  ;;  %v2237_v6 = vld [vmem:[%s5019_s3 + $0x18] sm:$0xff] (!%p2726_p13) }
 0x27c   : > { %v1882_v44 = vadd.f32 %v1866_v36, %v1770_v1  ;;  %v1414_v62 = vsub.f32 %v1391_v2, %v4025_v29  ;;  %v1868_v2 = vmul.f32 %v1852_v48, %v1852_v48  ;;  %v2235_v48 = vld [vmem:[%s5019_s3 + $0x8] sm:$0xff] (!%p2726_p13) }
 0x27d   : > { %v1544_v15 = vmul.f32 %v1528_v0, %v1528_v0 }
 0x27e   : > { %v1994_v50 = vadd.f32 %v1978_v41, %v1882_v44  ;;  %v1430_v31 = vmul.f32 %v1414_v62, %v1414_v62 }
 0x280   : > { %v1935_v7 = vpop.permute.xlu1 %1934  ;;  %vm2010_vm0 = vcmp.le.f32.partialorder %v1994_v50, 0.04  ;;  %v1446_v43 = vadd.f32 %v1430_v31, %v1334_v57 }
 0x281   : > { %v1961_v34 = vsub.f32 %v1935_v7, %v4034_v54 }
 0x283   : > { %v1977_v35 = vmul.f32 %v1961_v34, %v1961_v34 }
 0x284   : > { %v1499_v17 = vpop.permute.xlu1 %1498 }
 0x285   : > { %v1993_v26 = vadd.f32 %v1977_v35, %v1881_v22  ;;  %v1525_v46 = vsub.f32 %v1499_v17, %v4034_v54 }
 0x287   : > { %vm2009_vm4 = vcmp.le.f32.partialorder %v1993_v26, 0.04  ;;  %v1541_v19 = vmul.f32 %v1525_v46, %v1525_v46 }
 0x288   : > { %v1503_v8 = vpop.permute.xlu1 %1502  ;;  %vm4763_vm1 = vmpackc.low %vm2010_vm0, %vm2009_vm4  ;;  %vm3267_vm4 = vmmov (!%p2726_p13), 1  }
 0x289   : > { %v1526_v53 = vsub.f32 %v1503_v8, %v4034_v54  ;;  %2851 = vmatprep.subr.msk.bf16.mxu1 %vm4763_vm1, %v3266_v63  ;;  %v1557_v45 = vadd.f32 %v1541_v19, %v1445_v59  ;;  %vm2908_vm0 = vmpackc.low (!%p2726_p13), %vm2305_vm15, %vm3267_vm4 }
 0x28b   : > { %v1542_v16 = vmul.f32 %v1526_v53, %v1526_v53  ;;  %vm1573_vm3 = vcmp.le.f32.partialorder %v1557_v45, 0.04 }
 0x28d   : > { %v1558_v47 = vadd.f32 %v1542_v16, %v1446_v43  ;;  %v1739_v18 = vpop.permute.xlu1 %1738  ;;  %v2081_v43 = vld [vmem:[#allocation2] sm:$0xff] }
 0x28e   : > { %v1756_v23 = vsub.f32 %v1739_v18, %v4005_v33  ;;  %v2082_v18 = vld [vmem:[#allocation2 + $0x8] sm:$0x1] }
 0x28f   : > { %vm1574_vm6 = vcmp.le.f32.partialorder %v1558_v47, 0.04 }
 0x290   : > { %vm4771_vm10 = vmpackc.low %vm1574_vm6, %vm1573_vm3  ;;  %v1772_v12 = vmul.f32 %v1756_v23, %v1756_v23 }
 0x291   : > { %2852 = vmatpush3.bf16.msk.msra.mxu1 %vm4771_vm10, %v3266_v63 }
 0x292   : > { %v1831_v28 = vpop.permute.xlu1 %1830  ;;  %v1884_v38 = vadd.f32 %v1868_v2, %v1772_v12  ;;  %v2238_v12 = vld [vmem:[%s5019_s3 + $0x20] sm:$0xff] (!%p2726_p13)  ;;  %v2247_v2 = vld [vmem:[%s5019_s3 + $0x68] sm:$0xff] (!%p2726_p13) }
 0x293   : > { %v1851_v21 = vsub.f32 %v1831_v28, %v4025_v29 }
 0x295   : > { %v1867_v20 = vmul.f32 %v1851_v21, %v1851_v21 }
 0x297   : > { %v1298_v14 = vpop.permute.xlu1 %1297  ;;  %v1883_v58 = vadd.f32 %v1867_v20, %v1771_v32  ;;  %v5267_v20 = vsub.s32 (!%p2726_p13), 0, %v5266_v55 }
 0x298   : > { %v1319_v56 = vsub.f32 %v1298_v14, %v4005_v33  ;;  %v2234_v14 = vld [vmem:[%s5019_s3] sm:$0xff] (!%p2726_p13) }
 0x299   : > { %v1995_v61 = vadd.f32 %v1979_v11, %v1883_v58  ;;  %2883 = vmatprep.mubr.msk.f32.mxu0 (!%p2726_p13), %vm2256_vm2, %v2234_v14  ;;  %v2245_v58 = vld [vmem:[%s5019_s3 + $0x58] sm:$0xff] (!%p2726_p13)  ;;  %v2240_v11 = vld [vmem:[%s5019_s3 + $0x30] sm:$0xff] (!%p2726_p13) }
 0x29a   : > { %v1335_v41 = vmul.f32 %v1319_v56, %v1319_v56  ;;  %v2246_v56 = vld [vmem:[%s5019_s3 + $0x60] sm:$0xff] (!%p2726_p13) }
 0x29b   : > { %v1303_v39 = vpop.permute.xlu1 %1302  ;;  %vm2011_vm13 = vcmp.le.f32.partialorder %v1995_v61, 0.04 }
 0x29c   : > { %v1320_v60 = vsub.f32 %v1303_v39, %v4005_v33  ;;  %v1431_v33 = vmul.f32 %v1415_v49, %v1415_v49  ;;  %v2242_v39 = vld [vmem:[%s5019_s3 + $0x40] sm:$0xff] (!%p2726_p13)  ;;  %v2249_v49 = vld [vmem:[%s5019_s3 + $0x78] sm:$0xff] (!%p2726_p13) }
 0x29e   : > { %v1336_v44 = vmul.f32 %v1320_v60, %v1320_v60  ;;  %v2244_v60 = vld [vmem:[%s5019_s3 + $0x50] sm:$0xff] (!%p2726_p13) }
 0x2a0   : > { %v1399_v24 = vpop.permute.xlu1 %1398 }
 0x2a1   : > { %v1416_v37 = vsub.f32 %v1399_v24, %v4025_v29  ;;  %v1447_v29 = vadd.f32 %v1431_v33, %v1335_v41 }
 0x2a3   : > { %v1432_v36 = vmul.f32 %v1416_v37, %v1416_v37  ;;  %v2236_v37 = vld [vmem:[%s5019_s3 + $0x10] sm:$0xff] (!%p2726_p13) }
 0x2a5   : > { %v1947_v1 = vpop.permute.xlu1 %1946  ;;  %v1448_v13 = vadd.f32 %v1432_v36, %v1336_v44  ;;  %v2239_v36 = vld [vmem:[%s5019_s3 + $0x28] sm:$0xff] (!%p2726_p13) }
 0x2a6   : > { %v1964_v7 = vsub.f32 %v1947_v1, %v4034_v54  ;;  %v2248_v1 = vld [vmem:[%s5019_s3 + $0x70] sm:$0xff] (!%p2726_p13) }
 0x2a7   : > { %v1560_v50 = vadd.f32 %v1544_v15, %v1448_v13 }
 0x2a8   : > { %v1980_v34 = vmul.f32 %v1964_v7, %v1964_v7 }
 0x2a9   : > { %v1507_v10 = vpop.permute.xlu1 %1506  ;;  %vm1576_vm14 = vcmp.le.f32.partialorder %v1560_v50, 0.04 }
 0x2aa   : > { %v1996_v22 = vadd.f32 %v1980_v34, %v1884_v38  ;;  %v1527_v62 = vsub.f32 %v1507_v10, %v4034_v54  ;;  %v3079_v54 = vld [vmem:[%s3462_s11 + $0x8] ss:$16 sps:$4 sm:$0x1f]  }
 0x2ac   : > { %vm2012_vm7 = vcmp.le.f32.partialorder %v1996_v22, 0.04  ;;  %v1543_v35 = vmul.f32 %v1527_v62, %v1527_v62 }
 0x2ad   : > { %vm2023_vm8 = vmpackc.low %vm2012_vm7, %vm2011_vm13 }
 0x2ae   : > { %v1559_v17 = vadd.f32 %v1543_v35, %v1447_v29  ;;  %vm2024_vm9 = vmpackc.even %vm2023_vm8, %vm4763_vm1  ;;  %2853 = vmatprep.subr.msk.bf16.mxu1 %vm2023_vm8, %v3266_v63 }
 0x2af   : > { %v2028_v4 = vsel %vm2024_vm9, 16843009, %v5083_v52 }
 0x2b0   : > { %vm1575_vm12 = vcmp.le.f32.partialorder %v1559_v17, 0.04  ;;  %2032 = vst [vmem:[%s3466_s13 + $0x78] sm:$0xff] %v2028_v4 }
 0x2b1   : > { %vm1587_vm5 = vmpackc.low %vm1576_vm14, %vm1575_vm12 }
 0x2b2   : > { %vm1588_vm11 = vmpackc.even %vm1587_vm5, %vm4771_vm10  ;;  %2854 = vmatpush3.bf16.msk.msra.mxu1 %vm1587_vm5, %v3266_v63 }
 0x2b3   : > { %v1592_v51 = vsel %vm1588_vm11, 16843009, %v5083_v52 }
 0x2b4   : > { %1596 = vst [vmem:[%s3466_s13 + $0x58] sm:$0xff] %v1592_v51 }
 0x2b5   : > { %2213 = vmatmul.mubr.bf16.vlgmr.msra.gmra.mrb[0].mxu1 %v3079_v54 }
 0x2b6   : > { %2895 = vmatprep.mubr.msk.f32.mxu1 (!%p2726_p13), %vm2256_vm2, %v2242_v39 }
 0x2e1   : > { %v2833_v26 = vpop.f32.mrb[0].mxu0 }
 0x2e2   : > { %v2834_v46 = vpop.f32.mrb[1].mxu0 }
 0x2e3   : > { %v2835_v27 = vadd.f32 %v2834_v46, %v2833_v26  ;;  %v2836_v31 = vpop.f32.mrb[2].mxu0 }
 0x2e4   : > { %v2837_v19 = vpop.f32.mrb[3].mxu0 }
 0x2e5   : > { %v2838_v8 = vadd.f32 %v2837_v19, %v2836_v31 }
 0x388   : > { %v2855_v9 = vpop.f32.mrb[0].mxu1 }
 0x389   : > { %v2856_v59 = vpop.f32.mrb[1].mxu1 }
 0x38a   : > { %v2857_v57 = vadd.f32 %v2856_v59, %v2855_v9  ;;  %v2858_v53 = vpop.f32.mrb[2].mxu1 }
 0x38b   : > { %v2859_v45 = vpop.f32.mrb[3].mxu1 }
 0x38c   : > { %v2215_v16 = vadd.f32 %v2857_v57, %v2835_v27  ;;  %v2860_v47 = vadd.f32 %v2859_v45, %v2858_v53  ;;  %2228 = sbr.rel (%p2726_p13) target bundleno = 1171 (0x493), region = 67 }
 0x38e   : > { %v2221_v63 = vadd.f32 %v2215_v16, %v2081_v43  ;;  %v2218_v30 = vadd.f32 %v2860_v47, %v2838_v8 }
 0x390   : > { %2223 = vst [vmem:[#allocation2] sm:$0xff] %v2221_v63  ;;  %v2222_v52 = vadd.f32 %v2218_v30, %v2082_v18 }
 0x392   : > { %2224 = vst [vmem:[#allocation2 + $0x8] sm:$0x1] %v2222_v52 }
 0x397   : > { %v2229_v5 = vld [vmem:[#allocation2] sm:$0xff] }
 0x399   : > { %v2230_v28 = vld [vmem:[#allocation2 + $0x8] sm:$0x1] }
 0x39a   : > { %v2231_v21 = vmax.f32 %v2230_v28, 1.0 }
 0x39c   : > { %3092 = vrcp.f32 %v2231_v21 }
 0x3a6   : > { %v3093_v3 = vpop.eup %3092 }
 0x3a7   : > { %v2253_v23 = vrot.slane %v3093_v3, %v5267_v20 }
 0x3a9   : > { %v2254_v24 = vmul.f32 %v2253_v23, %v2229_v5  ;;  %v2255_v32 = vmul.f32 %v2253_v23, %v2230_v28 }
 0x3ab   : > { %v2907_v42 = vpack.c.bf16 %v2255_v32, %v2254_v24 }
 0x3ad   : > { %2909 = vmatprep.subr.msk.bf16.mxu0 %vm2908_vm0, %v2907_v42  ;;  %2913 = vmatprep.subr.msk.bf16.mxu1 %vm2908_vm0, %v2907_v42 }
 0x3ae   : > { %2912 = vmatpush3.bf16.msk.msra.mxu0 %vm2908_vm0, %v2907_v42  ;;  %2914 = vmatpush3.bf16.msk.msra.mxu1 %vm2908_vm0, %v2907_v42 }
 0x3b1   : > { %2884 = vmatmul.mubr.msk.f32.vlgmr.msra.gmra.mrb[0].mxu0 %vm2256_vm2, %v2235_v48  ;;  %2896 = vmatmul.mubr.msk.f32.vlgmr.msra.gmra.mrb[0].mxu1 %vm2256_vm2, %v2243_v40 }
 0x3b2   : > { %2886 = vmatprep.mubr.msk.f32.mxu0 %vm2256_vm2, %v2236_v37  ;;  %2898 = vmatprep.mubr.msk.f32.mxu1 %vm2256_vm2, %v2244_v60 }
 0x3b5   : > { %2887 = vmatmul.mubr.msk.f32.gmra.mrb[2].mxu0 %vm2256_vm2, %v2237_v6  ;;  %2899 = vmatmul.mubr.msk.f32.gmra.mrb[2].mxu1 %vm2256_vm2, %v2245_v58 }
 0x3b6   : > { %2889 = vmatprep.mubr.msk.f32.mxu0 %vm2256_vm2, %v2238_v12  ;;  %2901 = vmatprep.mubr.msk.f32.mxu1 %vm2256_vm2, %v2246_v56 }
 0x3b9   : > { %2890 = vmatmul.mubr.msk.f32.gmra.mrb[4].mxu0 %vm2256_vm2, %v2239_v36  ;;  %2902 = vmatmul.mubr.msk.f32.gmra.mrb[4].mxu1 %vm2256_vm2, %v2247_v2 }
 0x3ba   : > { %2892 = vmatprep.mubr.msk.f32.mxu0 %vm2256_vm2, %v2240_v11  ;;  %2904 = vmatprep.mubr.msk.f32.mxu1 %vm2256_vm2, %v2248_v1 }
 0x3bd   : > { %2893 = vmatmul.mubr.msk.f32.gmra.mrb[6].mxu0 %vm2256_vm2, %v2241_v25  ;;  %2905 = vmatmul.mubr.msk.f32.gmra.mrb[6].mxu1 %vm2256_vm2, %v2249_v49 }
 0x484   : > { %v2885_v0 = vpop.f32.mrb[0].mxu0  ;;  %v2897_v44 = vpop.f32.mrb[0].mxu1 }
 0x485   : > { %2455 = vst [vmem:[%s3464_s7 + $0x8] sm:$0xff] %v2885_v0  ;;  %2463 = vst [vmem:[%s3464_s7 + $0x48] sm:$0xff] %v2897_v44  ;;  %v2375_v7 = vpop.f32.mrb[1].mxu0  ;;  %v2415_v61 = vpop.f32.mrb[1].mxu1 }
 0x486   : > { %2454 = vst [vmem:[%s3464_s7] sm:$0xff] %v2375_v7  ;;  %2462 = vst [vmem:[%s3464_s7 + $0x40] sm:$0xff] %v2415_v61 }
 0x488   : > { %v2888_v38 = vpop.f32.mrb[2].mxu0  ;;  %v2900_v41 = vpop.f32.mrb[2].mxu1 }
 0x489   : > { %2457 = vst [vmem:[%s3464_s7 + $0x18] sm:$0xff] %v2888_v38  ;;  %2465 = vst [vmem:[%s3464_s7 + $0x58] sm:$0xff] %v2900_v41  ;;  %v2385_v13 = vpop.f32.mrb[3].mxu0  ;;  %v2425_v34 = vpop.f32.mrb[3].mxu1 }
 0x48a   : > { %2456 = vst [vmem:[%s3464_s7 + $0x10] sm:$0xff] %v2385_v13  ;;  %2464 = vst [vmem:[%s3464_s7 + $0x50] sm:$0xff] %v2425_v34 }
 0x48c   : > { %v2891_v10 = vpop.f32.mrb[4].mxu0  ;;  %v2903_v33 = vpop.f32.mrb[4].mxu1 }
 0x48d   : > { %2459 = vst [vmem:[%s3464_s7 + $0x28] sm:$0xff] %v2891_v10  ;;  %2467 = vst [vmem:[%s3464_s7 + $0x68] sm:$0xff] %v2903_v33  ;;  %v2395_v15 = vpop.f32.mrb[5].mxu0  ;;  %v2435_v22 = vpop.f32.mrb[5].mxu1 }
 0x48e   : > { %2458 = vst [vmem:[%s3464_s7 + $0x20] sm:$0xff] %v2395_v15  ;;  %2466 = vst [vmem:[%s3464_s7 + $0x60] sm:$0xff] %v2435_v22 }
 0x490   : > { %v2894_v62 = vpop.f32.mrb[6].mxu0  ;;  %v2906_v29 = vpop.f32.mrb[6].mxu1 }
 0x491   : > { %2461 = vst [vmem:[%s3464_s7 + $0x38] sm:$0xff] %v2894_v62  ;;  %2469 = vst [vmem:[%s3464_s7 + $0x78] sm:$0xff] %v2906_v29  ;;  %v2405_v35 = vpop.f32.mrb[7].mxu0  ;;  %v2445_v50 = vpop.f32.mrb[7].mxu1 }
 0x492   : > { %2460 = vst [vmem:[%s3464_s7 + $0x30] sm:$0xff] %v2405_v35  ;;  %2468 = vst [vmem:[%s3464_s7 + $0x70] sm:$0xff] %v2445_v50 }
 0x493 PF: > { %s2746_s28 = sshll.u32 %s3248_s27, 7  ;;  %s2488_s8 = sshll.u32 %s3464_s7, 4  ;;  %s4894_s8 = int_to_ptr.vmem [resolvable:$true] %s2488_s8 }
 0x494   : > { %s4891_s9 = scalar_lea.hbm %s5020_s4, %s2746_s28  ;;  %s5268_s15 = sand.u32 1, %s3228_s22  }
 0x495   : > { %s4898_s16 = scalar_lea.sflag [#allocation6], %s5268_s15  ;;  %s3094_s6 = scalar_lea.vmem %s4894_s8, 2048 }
 0x496   : > { %p3095_p0 = scmp.ne.s32.totalorder %s4894_s8, %s3094_s6  ;;  %s3268_s24 = smov [#allocation5]  }
 0x497   : > { %s3098_s12 = sshll.u32 %s3268_s24, 4  ;;  %s3099_s12 = int_to_ptr.vmem [resolvable:$false] %s3098_s12 }
 0x498   : > { %p3096_p1 = pnand %p3095_p0, %p3403_p10  ;;  %s3100_s2 = scalar_lea.vmem %s3099_s12, 4096 }
 0x499   : > { %p3101_p3 = scmp.lt.s32.totalorder %s4894_s8, %s3099_s12  ;;  %p3102_p6 = scmp.lt.s32.totalorder %s3100_s2, %s3094_s6 }
 0x49a   : > { %p3097_p5 = pneg %p3096_p1 }
 0x49b   : > { %p3103_p7 = por %p3102_p6, %p3101_p3 }
 0x49d   : > { %p3104_p8 = pnand %p3103_p7, %p3097_p5 }
 0x49f   : > { %3107 = shalt.err (!%p3104_p8)
}
 0x4a0   : > { %s3108_s7 = scalar_lea.hbm %s4891_s9, 2048  ;;  %s3112_s25 = scalar_lea.hbm %s5020_s4, 6144 }
 0x4a1   : > { %p3109_p9 = scmp.ne.s32.totalorder %s4891_s9, %s3108_s7  ;;  %p3113_p0 = scmp.lt.u32.totalorder %s4891_s9, %s5020_s4 }
 0x4a2   : > { %p3114_p1 = scmp.lt.u32.totalorder %s3112_s25, %s3108_s7  ;;  %p3116_p3 = scmp.lt.u32.totalorder %s3108_s7, %s4891_s9 }
 0x4a3   : > { %p3110_p11 = pnand %p3109_p9, %p3403_p10 }
 0x4a4   : > { %p3115_p5 = por %p3114_p1, %p3113_p0 }
 0x4a5   : > { %p3111_p13 = pneg %p3110_p11 }
 0x4a6   : > { %p3117_p6 = por %p3116_p3, %p3115_p5 }
 0x4a8   : > { %p3118_p7 = pnand %p3117_p6, %p3111_p13 }
 0x4aa   : > { %3121 = shalt.err (!%p3118_p7)
}
 0x4ab   : > { %s3269_s11 = smov 128   ;;  %s3270_s15 = smov 384  }
 0x4ac   : > { %s3271_s6 = smov 8   ;;  %s2915_s24 = smul.u32 48, %s3244_s26 }
 0x4ad   : > { %2916 = dma.vmem_to_hbm [thread:$0]  (%p3403_p10), %s4894_s8, 2048, %s4891_s9, %s4898_s16, %s3269_s11, %s3270_s15, %s3271_s6  }
 0x4ae   : > { %s2506_s12 = sshll.u32 %s3466_s13, 4  ;;  %s2503_s2 = sadd.s32 %s3248_s27, %s2915_s24  ;;  %s4928_s12 = int_to_ptr.vmem [resolvable:$true] %s2506_s12 }
 0x4af   : > { %s2749_s7 = sshll.u32 %s2503_s2, 7  ;;  %s5269_s28 = sand.u32 1, %s3216_s19  }
 0x4b0   : > { %s4933_s25 = scalar_lea.hbm %s5021_s5, %s2749_s7  ;;  %s4937_s17 = scalar_lea.sflag [#allocation8], %s5269_s28 }
 0x4b1   : > { %s3122_s29 = scalar_lea.vmem %s4928_s12, 2048  ;;  %s3272_s26 = smov [#allocation7]  }
 0x4b2   : > { %p3123_p8 = scmp.ne.s32.totalorder %s4928_s12, %s3122_s29  ;;  %s3126_s27 = sshll.u32 %s3272_s26, 4  ;;  %s3127_s27 = int_to_ptr.vmem [resolvable:$false] %s3126_s27 }
 0x4b3   : > { %s3128_s13 = scalar_lea.vmem %s3127_s27, 4096  ;;  %p3129_p11 = scmp.lt.s32.totalorder %s4928_s12, %s3127_s27 }
 0x4b4   : > { %p3124_p10 = pnand %p3123_p8, %p3424_p2  ;;  %p3130_p13 = scmp.lt.s32.totalorder %s3128_s13, %s3122_s29 }
 0x4b6   : > { %p3125_p9 = pneg %p3124_p10  ;;  %p3131_p0 = por %p3130_p13, %p3129_p11 }
 0x4b8   : > { %p3132_p1 = pnand %p3131_p0, %p3125_p9 }
 0x4ba   : > { %3135 = shalt.err (!%p3132_p1)
}
 0x4bb   : > { %s3136_s9 = scalar_lea.hbm %s4933_s25, 2048  ;;  %s3140_s24 = scalar_lea.hbm %s5021_s5, 12288 }
 0x4bc   : > { %p3137_p5 = scmp.ne.s32.totalorder %s4933_s25, %s3136_s9  ;;  %p3141_p7 = scmp.lt.u32.totalorder %s4933_s25, %s5021_s5 }
 0x4bd   : > { %p3142_p8 = scmp.lt.u32.totalorder %s3140_s24, %s3136_s9  ;;  %p3144_p9 = scmp.lt.u32.totalorder %s3136_s9, %s4933_s25 }
 0x4be   : > { %p3138_p3 = pnand %p3137_p5, %p3424_p2 }
 0x4bf   : > { %p3143_p10 = por %p3142_p8, %p3141_p7 }
 0x4c0   : > { %p3139_p6 = pneg %p3138_p3 }
 0x4c1   : > { %p3145_p11 = por %p3144_p9, %p3143_p10 }
 0x4c3   : > { %p3146_p13 = pnand %p3145_p11, %p3139_p6 }
 0x4c5   : > { %3149 = shalt.err (!%p3146_p13)
}
 0x4c6   : > { %2917 = dma.vmem_to_hbm [thread:$0]  (%p3424_p2), %s4928_s12, 2048, %s4933_s25, %s4937_s17, %s3269_s11, %s3270_s15, %s3271_s6  }
 0x4c7 PF: > { %p2927_p0 = scmp.ge.s32.totalorder %s3260_s30, 2  ;;  %s2521_s20 = sand.u32 1, %s3224_s21  }
 0x4c8   : > { %s2522_s23 = scalar_lea.sflag [#allocation6], %s2521_s20 }
 0x4c9   : > { %p2921_p1 = pnand %p2927_p0, %p3410_p12 }
 0x4cb   : > { %3203 = dma.done.wait (!%p2921_p1), %s2522_s23, 2048  }
 0x4cc   : > { %3205 = vsyncadd (!%p2921_p1), %s2522_s23, 4294965248  ;;  %s2530_s28 = sand.u32 1, %s3212_s18   ;;  %p2924_p5 = pnand %p2927_p0, %p3428_p4 }
 0x4cd   : > { %s2531_s29 = scalar_lea.sflag [#allocation8], %s2530_s28 }
 0x4ce   : > { %3207 = dma.done.wait (!%p2924_p5), %s2531_s29, 2048  }
 0x4cf   : > { %3209 = vsyncadd (!%p2924_p5), %s2531_s29, 4294965248  ;;  %s22_s30 = sadd.s32 1, %s3260_s30   ;;  %s5272_s21 = sld [smem:[#allocation11_spill]] }
 0x4d0   : > { %p4972_p2 = scmp.ge.s32.totalorder %s22_s30, 8   ;;  %s5273_s20 = sld [smem:[#allocation20_spill]] }
 0x4d1   : > { %s5274_s10 = sld [smem:[#allocation12_spill]]  ;;  %s5275_s23 = sld [smem:[#allocation19_spill]] }
 0x4d2   : > { %s5276_s24 = sld [smem:[#allocation13_spill]]  ;;  %s5277_s25 = sld [smem:[#allocation18_spill]] }
 0x4d3   : > { %s5278_s26 = sld [smem:[#allocation14_spill]]  ;;  %s5279_s27 = sld [smem:[#allocation15_spill]] }
 0x4d4   : > { %s5280_s28 = sld [smem:[#allocation16_spill]]  ;;  %s5281_s29 = sld [smem:[#allocation17_spill]] }
 0x4d5   : > { %s5282_s18 = smov %s3216_s19  ;;  %s5283_s19 = smov %s5272_s21 }
 0x4d6   : > { %s5284_s21 = smov %s3228_s22  ;;  %21 = sbr.rel (!%p4972_p2) target bundleno = 12 (0xc), region = 130 }
 0x4d7   : > { %s5285_s22 = smov %s5274_s10 }
 0x4dd   :  { %2536 = vsyncpa [#allocation6], 1 }
 0x4de   :  { %2538 = vsyncpa [#allocation6 + $0x1], 1 }
 0x4df   :  { %2539 = vsyncpa [#allocation8], 1 }
 0x4e0   :  { %2541 = vsyncpa [#allocation8 + $0x1], 1 }

</bundles_post_ra>
